<compile_context>
chip_gen: v6e
topology: v6e:2x2x1
jax: 0.10.0
libtpu: 0.0.40
codegen_flags: <defaults>
</compile_context>

<pallas_src>
import jax
import jax.numpy as jnp
from jax.experimental import pallas as pl
from jax.experimental.pallas import tpu as pltpu

BN_EPS = 1e-5
H1, H2, H3, H3_PAD = 1024, 256, 64, 128          # layer widths (layer-3 lane-padded 64 -> 128)
SLAB_W = H1 + H2 + H3_PAD                        # 1408 columns in the consolidated param slab
C1, C2, C3 = 0, H1, H1 + H2                      # per-layer column offsets (all multiples of 128)
ROW_GAMMA, ROW_BETA, ROW_W4, ROW_B4 = 0, 1, 2, 3  # slab row assignments


def _bn_relu(h, gamma, beta):
    """Training-mode BatchNorm1d (batch mean, biased batch var, eps=1e-5) + ReLU, fused into a
    per-column scale/shift so the element-wise work is 2 VALU ops.  All math in f32.
    One-pass statistics: var = E[h^2] - mean^2 (guarded against tiny negative cancellation)."""
    mean = jnp.mean(h, axis=0, keepdims=True)
    var = jnp.mean(h * h, axis=0, keepdims=True) - mean * mean
    var = jnp.maximum(var, 0.0)
    scale = gamma * jax.lax.rsqrt(var + BN_EPS)          # (1, N)
    shift = beta - mean * scale                          # (1, N)
    return jnp.maximum(h * scale + shift, 0.0)


def mlp_kernel(x_ref, w1_ref, w2_ref, w3_ref, p_ref, o_ref):
    # Activations live in f32; cast to bf16 only when feeding the MXU (weights already bf16).
    x = x_ref[...]

    # Layer 1: Linear(input, 1024) [bias dropped: cancelled by BN] + BN + ReLU
    h = jnp.dot(x.astype(jnp.bfloat16), w1_ref[...], preferred_element_type=jnp.float32)
    h = _bn_relu(h,
                 p_ref[ROW_GAMMA:ROW_GAMMA + 1, C1:C1 + H1],
                 p_ref[ROW_BETA:ROW_BETA + 1, C1:C1 + H1])

    # Layer 2: Linear(1024, 256) + BN + ReLU
    h = jnp.dot(h.astype(jnp.bfloat16), w2_ref[...], preferred_element_type=jnp.float32)
    h = _bn_relu(h,
                 p_ref[ROW_GAMMA:ROW_GAMMA + 1, C2:C2 + H2],
                 p_ref[ROW_BETA:ROW_BETA + 1, C2:C2 + H2])

    # Layer 3: Linear(256, 64 padded to 128) + BN + ReLU (padded cols stay exactly 0:
    # zero w3 columns -> zero activations -> gamma=beta=0 keeps them 0 after BN/ReLU).
    h = jnp.dot(h.astype(jnp.bfloat16), w3_ref[...], preferred_element_type=jnp.float32)
    h = _bn_relu(h,
                 p_ref[ROW_GAMMA:ROW_GAMMA + 1, C3:C3 + H3_PAD],
                 p_ref[ROW_BETA:ROW_BETA + 1, C3:C3 + H3_PAD])

    # Layer 4: Linear(64, 1) as VPU multiply + lane (XLU) sum — no N=1 MXU matmul.
    w4 = p_ref[ROW_W4:ROW_W4 + 1, C3:C3 + H3_PAD]        # (1, 128), zeros on padded lanes
    b4 = p_ref[ROW_B4:ROW_B4 + 1, 0:1]                   # (1, 1)
    out = jnp.sum(h * w4, axis=-1, keepdims=True) + b4
    o_ref[...] = out.astype(o_ref.dtype)


def pack_params(params):
    """One-time packing of PyTorch-like f32 params into kernel storage:
       - bf16 weight matrices (layer-3 zero-padded 64 -> 128 output columns)
       - one (8, 1408) f32 slab for gamma/beta (rows 0/1), w4 (row 2, layer-3 cols), b4 ([3, 0]).
       Linear biases b1/b2/b3 are dropped (exactly cancelled by training-mode BatchNorm)."""
    slab = jnp.zeros((8, SLAB_W), jnp.float32)
    slab = slab.at[ROW_GAMMA, C1:C1 + H1].set(params["g1"].reshape(-1))
    slab = slab.at[ROW_BETA,  C1:C1 + H1].set(params["be1"].reshape(-1))
    slab = slab.at[ROW_GAMMA, C2:C2 + H2].set(params["g2"].reshape(-1))
    slab = slab.at[ROW_BETA,  C2:C2 + H2].set(params["be2"].reshape(-1))
    slab = slab.at[ROW_GAMMA, C3:C3 + H3].set(params["g3"].reshape(-1))   # padded cols stay 0
    slab = slab.at[ROW_BETA,  C3:C3 + H3].set(params["be3"].reshape(-1))  # padded cols stay 0
    slab = slab.at[ROW_W4,    C3:C3 + H3].set(params["w4"].reshape(-1))   # padded cols stay 0
    slab = slab.at[ROW_B4, 0].set(params["b4"][0, 0])
    return {
        "w1": params["w1"].astype(jnp.bfloat16),
        "w2": params["w2"].astype(jnp.bfloat16),
        "w3": jnp.pad(params["w3"], ((0, 0), (0, H3_PAD - H3))).astype(jnp.bfloat16),
        "slab": slab,
    }


def _nbytes(a):
    return int(a.size) * jnp.dtype(a.dtype).itemsize


def linear_nn_bc_forward(x, packed):
    """x: (B, num_features, num_points) float32, packed: output of pack_params. Returns (B, 1) f32."""
    B = x.shape[0]
    assert B >= 2, "training-mode BatchNorm statistics need batch >= 2"
    x_flat = x.reshape(B, -1).astype(jnp.float32)   # nn.Flatten (row-major over trailing dims)
    input_size = x_flat.shape[1]

    flat = [x_flat, packed["w1"], packed["w2"], packed["w3"], packed["slab"]]

    # VMEM budget from the real footprint (+ f32 intermediates), generous headroom for compiler
    # temporaries, capped below v7x's 64 MiB physical VMEM.
    operand_bytes = sum(_nbytes(a) for a in flat) + B * 4
    act_bytes = B * (H1 + H2 + H3_PAD) * 4
    vmem_limit = int(min(max(4 * (operand_bytes + act_bytes), 8 << 20), 48 << 20))

    # Advisory cost hint: matmul flops dominate; BN/ReLU element-wise work folded in approximately.
    flops = 2 * B * (input_size * H1 + H1 * H2 + H2 * H3_PAD) + 8 * B * (H1 + H2 + H3_PAD)
    cost = pl.CostEstimate(flops=int(flops),
                           transcendentals=int(H1 + H2 + H3_PAD),
                           bytes_accessed=int(operand_bytes))

    vmem_spec = pl.BlockSpec(memory_space=pltpu.MemorySpace.VMEM)
    return pl.pallas_call(
        mlp_kernel,
        out_shape=jax.ShapeDtypeStruct((B, 1), jnp.float32),
        in_specs=[vmem_spec] * len(flat),
        out_specs=vmem_spec,
        compiler_params=pltpu.CompilerParams(vmem_limit_bytes=vmem_limit),
        cost_estimate=cost,
    )(*flat)


def init_params(key, input_size):
    """Deterministic synthetic parameters (PyTorch-like init, weights stored transposed (in, out))."""
    dims = [(input_size, 1024), (1024, 256), (256, 64), (64, 1)]
    params = {}
    keys = jax.random.split(key, 16)
    k = 0
    for idx, (din, dout) in enumerate(dims, start=1):
        bound = 1.0 / jnp.sqrt(din)
        params[f"w{idx}"] = jax.random.uniform(
            keys[k], (din, dout), jnp.float32, -bound, bound); k += 1
        params[f"b{idx}"] = jax.random.uniform(
            keys[k], (1, dout), jnp.float32, -bound, bound); k += 1
        if idx < 4:  # BN affine params for the first three blocks
            params[f"g{idx}"] = 1.0 + 0.1 * jax.random.normal(keys[k], (1, dout), jnp.float32); k += 1
            params[f"be{idx}"] = 0.1 * jax.random.normal(keys[k], (1, dout), jnp.float32); k += 1
    return params


def reference_forward(x, params):
    """Pure-JAX reference mirroring the PyTorch module (including the linear biases, which are
    mathematically cancelled by train-mode BN) with the kernel's precision plan: bf16 weights &
    matmul inputs, f32 accumulation, f32 training-mode BN with biased variance, eps=1e-5."""
    h = x.reshape(x.shape[0], -1)
    for idx in range(1, 4):
        w = params[f"w{idx}"].astype(jnp.bfloat16)
        h = jnp.dot(h.astype(jnp.bfloat16), w,
                    preferred_element_type=jnp.float32) + params[f"b{idx}"]
        mean = jnp.mean(h, axis=0, keepdims=True)
        var = jnp.mean((h - mean) ** 2, axis=0, keepdims=True)
        h = jnp.maximum((h - mean) * jax.lax.rsqrt(var + BN_EPS)
                        * params[f"g{idx}"] + params[f"be{idx}"], 0.0)
    return h @ params["w4"] + params["b4"]


if __name__ == "__main__":
    B, num_features, num_points = 8, 4, 16
    input_size = num_features * num_points

    key = jax.random.PRNGKey(0)
    kx, kp = jax.random.split(key)
    x = jax.random.normal(kx, (B, num_features, num_points), jnp.float32)
    params = init_params(kp, input_size)
    packed = pack_params(params)

    out = linear_nn_bc_forward(x, packed)
    out = jax.block_until_ready(out)

    ref = reference_forward(x, params)
    assert out.shape == (B, 1)
    assert jnp.allclose(out, ref, atol=2e-3, rtol=2e-3), (out, ref)

    print("KERNEL_OK")
</pallas_src>

<mosaic_0001>
module attributes {stable_mosaic.version = 11 : i64} {
  func.func @mlp_kernel(%arg0: memref<8x64xf32, #tpu.memory_space<vmem>>, %arg1: memref<64x1024xbf16, #tpu.memory_space<vmem>>, %arg2: memref<1024x256xbf16, #tpu.memory_space<vmem>>, %arg3: memref<256x128xbf16, #tpu.memory_space<vmem>>, %arg4: memref<8x1408xf32, #tpu.memory_space<vmem>>, %arg5: memref<8x1xf32, #tpu.memory_space<vmem>>) attributes {dimension_semantics = [], scalar_prefetch = 0 : i64, scratch_operands = 0 : i64, tpu.core_type = #tpu.core_type<tc>} {
    %c0 = arith.constant 0 : index
    %c0_0 = arith.constant 0 : index
    %0 = vector.load %arg0[%c0, %c0_0] : memref<8x64xf32, #tpu.memory_space<vmem>>, vector<8x64xf32>
    %1 = arith.truncf %0 : vector<8x64xf32> to vector<8x64xbf16>
    %c0_1 = arith.constant 0 : index
    %c0_2 = arith.constant 0 : index
    %2 = vector.load %arg1[%c0_1, %c0_2] : memref<64x1024xbf16, #tpu.memory_space<vmem>>, vector<64x1024xbf16>
    %cst = arith.constant dense<0.000000e+00> : vector<8x1024xf32>
    %3 = tpu.matmul %1, %2, %cst {dimension_numbers = #tpu.dot_dimension_numbers<[1], [0], [0], [1], [0, 0, 1, 1], [], []>} : vector<8x64xbf16>, vector<64x1024xbf16>, vector<8x1024xf32> -> vector<8x1024xf32>
    %c0_3 = arith.constant 0 : index
    %c0_4 = arith.constant 0 : index
    %4 = vector.load %arg4[%c0_3, %c0_4] : memref<8x1408xf32, #tpu.memory_space<vmem>>, vector<1x1024xf32>
    %c1 = arith.constant 1 : index
    %c0_5 = arith.constant 0 : index
    %5 = vector.load %arg4[%c1, %c0_5] : memref<8x1408xf32, #tpu.memory_space<vmem>>, vector<1x1024xf32>
    %cst_6 = arith.constant dense<0.000000e+00> : vector<1024xf32>
    %6 = vector.multi_reduction <add>, %3, %cst_6 [0] : vector<8x1024xf32> to vector<1024xf32>
    %7 = vector.shape_cast %6 : vector<1024xf32> to vector<1x1024xf32>
    %cst_7 = arith.constant 8.000000e+00 : f32
    %8 = vector.broadcast %cst_7 : f32 to vector<1x1024xf32>
    %9 = arith.divf %7, %8 : vector<1x1024xf32>
    %10 = arith.mulf %3, %3 : vector<8x1024xf32>
    %cst_8 = arith.constant dense<0.000000e+00> : vector<1024xf32>
    %11 = vector.multi_reduction <add>, %10, %cst_8 [0] : vector<8x1024xf32> to vector<1024xf32>
    %12 = vector.shape_cast %11 : vector<1024xf32> to vector<1x1024xf32>
    %cst_9 = arith.constant 8.000000e+00 : f32
    %13 = vector.broadcast %cst_9 : f32 to vector<1x1024xf32>
    %14 = arith.divf %12, %13 : vector<1x1024xf32>
    %15 = arith.mulf %9, %9 : vector<1x1024xf32>
    %16 = arith.subf %14, %15 : vector<1x1024xf32>
    %cst_10 = arith.constant 0.000000e+00 : f32
    %17 = vector.broadcast %cst_10 : f32 to vector<1x1024xf32>
    %18 = arith.maximumf %16, %17 : vector<1x1024xf32>
    %cst_11 = arith.constant 9.99999974E-6 : f32
    %19 = vector.broadcast %cst_11 : f32 to vector<1x1024xf32>
    %20 = arith.addf %18, %19 : vector<1x1024xf32>
    %21 = math.rsqrt %20 : vector<1x1024xf32>
    %22 = arith.mulf %4, %21 : vector<1x1024xf32>
    %23 = arith.mulf %9, %22 : vector<1x1024xf32>
    %24 = arith.subf %5, %23 : vector<1x1024xf32>
    %25 = vector.broadcast %22 : vector<1x1024xf32> to vector<8x1024xf32>
    %26 = arith.mulf %3, %25 : vector<8x1024xf32>
    %27 = vector.broadcast %24 : vector<1x1024xf32> to vector<8x1024xf32>
    %28 = arith.addf %26, %27 : vector<8x1024xf32>
    %cst_12 = arith.constant 0.000000e+00 : f32
    %29 = vector.broadcast %cst_12 : f32 to vector<8x1024xf32>
    %30 = arith.maximumf %28, %29 : vector<8x1024xf32>
    %31 = arith.truncf %30 : vector<8x1024xf32> to vector<8x1024xbf16>
    %c0_13 = arith.constant 0 : index
    %c0_14 = arith.constant 0 : index
    %32 = vector.load %arg2[%c0_13, %c0_14] : memref<1024x256xbf16, #tpu.memory_space<vmem>>, vector<1024x256xbf16>
    %cst_15 = arith.constant dense<0.000000e+00> : vector<8x256xf32>
    %33 = tpu.matmul %31, %32, %cst_15 {dimension_numbers = #tpu.dot_dimension_numbers<[1], [0], [0], [1], [0, 0, 1, 1], [], []>} : vector<8x1024xbf16>, vector<1024x256xbf16>, vector<8x256xf32> -> vector<8x256xf32>
    %c0_16 = arith.constant 0 : index
    %c1024 = arith.constant 1024 : index
    %34 = vector.load %arg4[%c0_16, %c1024] : memref<8x1408xf32, #tpu.memory_space<vmem>>, vector<1x256xf32>
    %c1_17 = arith.constant 1 : index
    %c1024_18 = arith.constant 1024 : index
    %35 = vector.load %arg4[%c1_17, %c1024_18] : memref<8x1408xf32, #tpu.memory_space<vmem>>, vector<1x256xf32>
    %cst_19 = arith.constant dense<0.000000e+00> : vector<256xf32>
    %36 = vector.multi_reduction <add>, %33, %cst_19 [0] : vector<8x256xf32> to vector<256xf32>
    %37 = vector.shape_cast %36 : vector<256xf32> to vector<1x256xf32>
    %cst_20 = arith.constant 8.000000e+00 : f32
    %38 = vector.broadcast %cst_20 : f32 to vector<1x256xf32>
    %39 = arith.divf %37, %38 : vector<1x256xf32>
    %40 = arith.mulf %33, %33 : vector<8x256xf32>
    %cst_21 = arith.constant dense<0.000000e+00> : vector<256xf32>
    %41 = vector.multi_reduction <add>, %40, %cst_21 [0] : vector<8x256xf32> to vector<256xf32>
    %42 = vector.shape_cast %41 : vector<256xf32> to vector<1x256xf32>
    %cst_22 = arith.constant 8.000000e+00 : f32
    %43 = vector.broadcast %cst_22 : f32 to vector<1x256xf32>
    %44 = arith.divf %42, %43 : vector<1x256xf32>
    %45 = arith.mulf %39, %39 : vector<1x256xf32>
    %46 = arith.subf %44, %45 : vector<1x256xf32>
    %cst_23 = arith.constant 0.000000e+00 : f32
    %47 = vector.broadcast %cst_23 : f32 to vector<1x256xf32>
    %48 = arith.maximumf %46, %47 : vector<1x256xf32>
    %cst_24 = arith.constant 9.99999974E-6 : f32
    %49 = vector.broadcast %cst_24 : f32 to vector<1x256xf32>
    %50 = arith.addf %48, %49 : vector<1x256xf32>
    %51 = math.rsqrt %50 : vector<1x256xf32>
    %52 = arith.mulf %34, %51 : vector<1x256xf32>
    %53 = arith.mulf %39, %52 : vector<1x256xf32>
    %54 = arith.subf %35, %53 : vector<1x256xf32>
    %55 = vector.broadcast %52 : vector<1x256xf32> to vector<8x256xf32>
    %56 = arith.mulf %33, %55 : vector<8x256xf32>
    %57 = vector.broadcast %54 : vector<1x256xf32> to vector<8x256xf32>
    %58 = arith.addf %56, %57 : vector<8x256xf32>
    %cst_25 = arith.constant 0.000000e+00 : f32
    %59 = vector.broadcast %cst_25 : f32 to vector<8x256xf32>
    %60 = arith.maximumf %58, %59 : vector<8x256xf32>
    %61 = arith.truncf %60 : vector<8x256xf32> to vector<8x256xbf16>
    %c0_26 = arith.constant 0 : index
    %c0_27 = arith.constant 0 : index
    %62 = vector.load %arg3[%c0_26, %c0_27] : memref<256x128xbf16, #tpu.memory_space<vmem>>, vector<256x128xbf16>
    %cst_28 = arith.constant dense<0.000000e+00> : vector<8x128xf32>
    %63 = tpu.matmul %61, %62, %cst_28 {dimension_numbers = #tpu.dot_dimension_numbers<[1], [0], [0], [1], [0, 0, 1, 1], [], []>} : vector<8x256xbf16>, vector<256x128xbf16>, vector<8x128xf32> -> vector<8x128xf32>
    %c0_29 = arith.constant 0 : index
    %c1280 = arith.constant 1280 : index
    %64 = vector.load %arg4[%c0_29, %c1280] : memref<8x1408xf32, #tpu.memory_space<vmem>>, vector<1x128xf32>
    %c1_30 = arith.constant 1 : index
    %c1280_31 = arith.constant 1280 : index
    %65 = vector.load %arg4[%c1_30, %c1280_31] : memref<8x1408xf32, #tpu.memory_space<vmem>>, vector<1x128xf32>
    %cst_32 = arith.constant dense<0.000000e+00> : vector<128xf32>
    %66 = vector.multi_reduction <add>, %63, %cst_32 [0] : vector<8x128xf32> to vector<128xf32>
    %67 = vector.shape_cast %66 : vector<128xf32> to vector<1x128xf32>
    %cst_33 = arith.constant 8.000000e+00 : f32
    %68 = vector.broadcast %cst_33 : f32 to vector<1x128xf32>
    %69 = arith.divf %67, %68 : vector<1x128xf32>
    %70 = arith.mulf %63, %63 : vector<8x128xf32>
    %cst_34 = arith.constant dense<0.000000e+00> : vector<128xf32>
    %71 = vector.multi_reduction <add>, %70, %cst_34 [0] : vector<8x128xf32> to vector<128xf32>
    %72 = vector.shape_cast %71 : vector<128xf32> to vector<1x128xf32>
    %cst_35 = arith.constant 8.000000e+00 : f32
    %73 = vector.broadcast %cst_35 : f32 to vector<1x128xf32>
    %74 = arith.divf %72, %73 : vector<1x128xf32>
    %75 = arith.mulf %69, %69 : vector<1x128xf32>
    %76 = arith.subf %74, %75 : vector<1x128xf32>
    %cst_36 = arith.constant 0.000000e+00 : f32
    %77 = vector.broadcast %cst_36 : f32 to vector<1x128xf32>
    %78 = arith.maximumf %76, %77 : vector<1x128xf32>
    %cst_37 = arith.constant 9.99999974E-6 : f32
    %79 = vector.broadcast %cst_37 : f32 to vector<1x128xf32>
    %80 = arith.addf %78, %79 : vector<1x128xf32>
    %81 = math.rsqrt %80 : vector<1x128xf32>
    %82 = arith.mulf %64, %81 : vector<1x128xf32>
    %83 = arith.mulf %69, %82 : vector<1x128xf32>
    %84 = arith.subf %65, %83 : vector<1x128xf32>
    %85 = vector.broadcast %82 : vector<1x128xf32> to vector<8x128xf32>
    %86 = arith.mulf %63, %85 : vector<8x128xf32>
    %87 = vector.broadcast %84 : vector<1x128xf32> to vector<8x128xf32>
    %88 = arith.addf %86, %87 : vector<8x128xf32>
    %cst_38 = arith.constant 0.000000e+00 : f32
    %89 = vector.broadcast %cst_38 : f32 to vector<8x128xf32>
    %90 = arith.maximumf %88, %89 : vector<8x128xf32>
    %c2 = arith.constant 2 : index
    %c1280_39 = arith.constant 1280 : index
    %91 = vector.load %arg4[%c2, %c1280_39] : memref<8x1408xf32, #tpu.memory_space<vmem>>, vector<1x128xf32>
    %c3 = arith.constant 3 : index
    %c0_40 = arith.constant 0 : index
    %92 = vector.load %arg4[%c3, %c0_40] : memref<8x1408xf32, #tpu.memory_space<vmem>>, vector<1x1xf32>
    %93 = vector.broadcast %91 : vector<1x128xf32> to vector<8x128xf32>
    %94 = arith.mulf %90, %93 : vector<8x128xf32>
    %cst_41 = arith.constant dense<0.000000e+00> : vector<8xf32>
    %95 = vector.multi_reduction <add>, %94, %cst_41 [1] : vector<8x128xf32> to vector<8xf32>
    %96 = vector.shape_cast %95 : vector<8xf32> to vector<8x1xf32>
    %97 = vector.broadcast %92 : vector<1x1xf32> to vector<8x1xf32>
    %98 = arith.addf %96, %97 : vector<8x1xf32>
    %c0_42 = arith.constant 0 : index
    %c0_43 = arith.constant 0 : index
    %99 = vector.load %arg5[%c0_42, %c0_43] : memref<8x1xf32, #tpu.memory_space<vmem>>, vector<8x1xf32>
    tpu.vector_store %arg5[%c0_42, %c0_43], %98 {strides = array<i32>} : memref<8x1xf32, #tpu.memory_space<vmem>>, vector<8x1xf32>,
    return
  }
}

</mosaic_0001>

<bundles_post_ra>
// kernel: tpu_custom_call.1
= control target key start
LH: loop header
LB: loop body
LE: loop exit
PB: predicated region body
PF: predicated region fallthrough
CT: control target
= control target key end

     0   :  { %10 = vsyncpa [#allocation3], 0  ;;  %s2882_s0 = inlined_call_operand.hbm [shape: f32[8,64], index: 0, kind: input, shape index: {}]   ;;  %s2883_s1 = inlined_call_operand.hbm [shape: bf16[64,1024], index: 1, kind: input, shape index: {}]   ;;  %s2884_s2 = inlined_call_operand.hbm [shape: bf16[1024,256], index: 2, kind: input, shape index: {}]   ;;  %s2885_s3 = inlined_call_operand.hbm [shape: bf16[256,128], index: 3, kind: input, shape index: {}]   ;;  %s2886_s4 = inlined_call_operand.hbm [shape: f32[8,1408], index: 4, kind: input, shape index: {}]   ;;  %s2887_s5 = inlined_call_operand.vmem [shape: f32[8,1], index: 5, kind: output, shape index: {}]  }
   0x1   :  { %11 = vsyncpa [#allocation5], 0 }
   0x2   :  { %12 = vsyncpa [#allocation8], 0  ;;  %s2663_s18 = smov [#allocation4]  }
   0x3   :  { %s28_s19 = sshll.u32 %s2663_s18, 4  ;;  %s29_s19 = int_to_ptr.vmem [resolvable:$true] %s28_s19 }
   0x4   :  { %s2565_s20 = scalar_lea.vmem %s29_s19, 4096  ;;  %p2570_p1 = scmp.lt.s32.totalorder %s29_s19, %s29_s19 }
   0x5   :  { %p2566_p0 = scmp.ne.s32.totalorder %s29_s19, %s2565_s20  ;;  %p2571_p2 = scmp.lt.s32.totalorder %s2565_s20, %s2565_s20 }
   0x7   :  { %p2572_p3 = por %p2571_p2, %p2570_p1 }
   0x9   :  { %p2573_p4 = pnand %p2572_p3, %p2566_p0 }
   0xb   :  { %2576 = shalt.err (!%p2573_p4)
}
   0xc   :  { %s2664_s21 = smov 512   ;;  %s2665_s22 = smov 32  }
   0xd   :  { %34 = dma.hbm_to_vmem [thread:$0]  %s2883_s1, 4096, %s29_s19, [#allocation5], %s2664_s21, %s2664_s21, %s2665_s22  }
   0xe   :  { %s2666_s25 = smov [#allocation7]  }
   0xf   :  { %s52_s26 = sshll.u32 %s2666_s25, 4  ;;  %s53_s26 = int_to_ptr.vmem [resolvable:$true] %s52_s26 }
  0x10   :  { %s2585_s27 = scalar_lea.vmem %s53_s26, 2048  ;;  %p2590_p6 = scmp.lt.s32.totalorder %s53_s26, %s53_s26 }
  0x11   :  { %p2586_p5 = scmp.ne.s32.totalorder %s53_s26, %s2585_s27  ;;  %p2591_p7 = scmp.lt.s32.totalorder %s2585_s27, %s2585_s27 }
  0x13   :  { %p2592_p8 = por %p2591_p7, %p2590_p6 }
  0x15   :  { %p2593_p9 = pnand %p2592_p8, %p2586_p5 }
  0x17   :  { %2596 = shalt.err (!%p2593_p9)
}
  0x18   :  { %s2667_s28 = smov 64   ;;  %s2668_s29 = smov 4  }
  0x19   :  { %58 = dma.hbm_to_vmem [thread:$0]  %s2885_s3, 2048, %s53_s26, [#allocation8], %s2667_s28, %s2667_s28, %s2668_s29  }
  0x1a   :  { %s2669_s7 = smov [#allocation2]   ;;  %s2670_s9 = smov [#allocation6]  }
  0x1b   :  { %s19_s8 = sshll.u32 %s2669_s7, 4  ;;  %s40_s1 = sshll.u32 %s2670_s9, 4  ;;  %s20_s8 = int_to_ptr.vmem [resolvable:$true] %s19_s8  ;;  %s41_s1 = int_to_ptr.vmem [resolvable:$true] %s40_s1 }
  0x1c   :  { %s2605_s10 = scalar_lea.vmem %s20_s8, 128  ;;  %p2610_p11 = scmp.lt.s32.totalorder %s20_s8, %s20_s8 }
  0x1d   :  { %p2606_p10 = scmp.ne.s32.totalorder %s20_s8, %s2605_s10  ;;  %p2611_p12 = scmp.lt.s32.totalorder %s2605_s10, %s2605_s10 }
  0x1f   :  { %p2612_p13 = por %p2611_p12, %p2610_p11 }
  0x21   :  { %p2613_p0 = pnand %p2612_p13, %p2606_p10 }
  0x23   :  { %2616 = shalt.err (!%p2613_p0)
}
  0x24   :  { %22 = dma.hbm_to_vmem [thread:$0]  %s2882_s0, 128, %s20_s8, [#allocation3]  }
  0x25   :  { %s2625_s13 = scalar_lea.vmem %s41_s1, 16384  ;;  %p2630_p2 = scmp.lt.s32.totalorder %s41_s1, %s41_s1 }
  0x26   :  { %p2626_p1 = scmp.ne.s32.totalorder %s41_s1, %s2625_s13  ;;  %p2631_p3 = scmp.lt.s32.totalorder %s2625_s13, %s2625_s13 }
  0x28   :  { %p2632_p4 = por %p2631_p3, %p2630_p2 }
  0x2a   :  { %p2633_p5 = pnand %p2632_p4, %p2626_p1 }
  0x2c   :  { %2636 = shalt.err (!%p2633_p5)
}
  0x2d   :  { %s2671_s3 = smov 128   ;;  %s2672_s14 = smov 8  }
  0x2e   :  { %46 = dma.hbm_to_vmem [thread:$0]  %s2884_s2, 16384, %s41_s1, [#allocation5], %s2671_s3, %s2671_s3, %s2672_s14  }
  0x2f   :  { %s2673_s17 = smov [#allocation9]  }
  0x30   :  { %s65_s18 = sshll.u32 %s2673_s17, 4  ;;  %s66_s18 = int_to_ptr.vmem [resolvable:$true] %s65_s18 }
  0x31   :  { %s2645_s19 = scalar_lea.vmem %s66_s18, 1408  ;;  %p2650_p7 = scmp.lt.s32.totalorder %s66_s18, %s66_s18 }
  0x32   :  { %p2646_p6 = scmp.ne.s32.totalorder %s66_s18, %s2645_s19  ;;  %p2651_p8 = scmp.lt.s32.totalorder %s2645_s19, %s2645_s19 }
  0x34   :  { %p2652_p9 = por %p2651_p8, %p2650_p7 }
  0x36   :  { %p2653_p10 = pnand %p2652_p9, %p2646_p6 }
  0x38   :  { %2656 = shalt.err (!%p2653_p10)
}
  0x39   :  { %68 = dma.hbm_to_vmem [thread:$0]  %s2886_s4, 1408, %s66_s18, [#allocation8]  }
  0x3a   :  { %2657 = dma.done.wait [#allocation3], 128  }
  0x3b   :  { %2658 = vsyncadd [#allocation3], 4294967168 }
  0x3c   :  { %2659 = dma.done.wait [#allocation5], 20480  }
  0x3d   :  { %2660 = vsyncadd [#allocation5], 4294946816 }
  0x3e   :  { %2661 = dma.done.wait [#allocation8], 3456  }
  0x3f   :  { %2662 = vsyncadd [#allocation8], 4294963840  ;;  %v2674_v0 = vmov 0   ;;  %v111_v1 = vld [vmem:[#allocation4 + $0xc0] sm:$0xff]  ;;  %v113_v13 = vld [vmem:[#allocation4 + $0xd0] sm:$0xff]  ;;  %vm279_vm0 = vcmask 523264  }
  0x40   :  { %315 = vmatprep.mubr.bf16.mxu1 %v2674_v0  ;;  %397 = vmatprep.mubr.bf16.mxu0 %v2674_v0  ;;  %v115_v2 = vld [vmem:[#allocation4 + $0xe0] sm:$0xff]  ;;  %v117_v14 = vld [vmem:[#allocation4 + $0xf0] sm:$0xff]  ;;  %v112_v25 = vld [vmem:[#allocation4 + $0xc8] sm:$0xff]  ;;  %vm2103_vm1 = vcmask 7168  }
  0x41   :  { %v103_v3 = vld [vmem:[#allocation4 + $0x80] sm:$0xff]  ;;  %v2137_v4 = vcombine.high %v111_v1, %v115_v2  ;;  %v2136_v5 = vcombine.low %v111_v1, %v115_v2  ;;  %v2141_v16 = vcombine.high %v113_v13, %v117_v14  ;;  %v2140_v17 = vcombine.low %v113_v13, %v117_v14  ;;  %v105_v18 = vld [vmem:[#allocation4 + $0x90] sm:$0xff]  ;;  %v85_v27 = vld [vmem:[#allocation2] sm:$0xff] }
  0x42   :  { %v107_v6 = vld [vmem:[#allocation4 + $0xa0] sm:$0xff]  ;;  %v109_v19 = vld [vmem:[#allocation4 + $0xb0] sm:$0xff]  ;;  %v116_v28 = vld [vmem:[#allocation4 + $0xe8] sm:$0xff]  ;;  %v86_v38 = vpack.c.bf16 %v85_v27, %v85_v27 }
  0x43   :  { %v2129_v7 = vcombine.high %v103_v3, %v107_v6  ;;  %v95_v8 = vld [vmem:[#allocation4 + $0x40] sm:$0xff]  ;;  %291 = vmatprep.subr.bf16.mxu1 %v2137_v4  ;;  %v2128_v10 = vcombine.low %v103_v3, %v107_v6  ;;  %v2133_v20 = vcombine.high %v105_v18, %v109_v19  ;;  %v97_v21 = vld [vmem:[#allocation4 + $0x50] sm:$0xff]  ;;  %373 = vmatprep.subr.bf16.mxu0 %v2141_v16  ;;  %v104_v33 = vld [vmem:[#allocation4 + $0x88] sm:$0xff] }
  0x44   :  { %v99_v9 = vld [vmem:[#allocation4 + $0x60] sm:$0xff]  ;;  %292 = vmatpush1.bf16.msra.mxu1 %v2136_v5  ;;  %v101_v22 = vld [vmem:[#allocation4 + $0x70] sm:$0xff]  ;;  %374 = vmatpush1.bf16.msra.mxu0 %v2140_v17  ;;  %v2132_v26 = vcombine.low %v105_v18, %v109_v19  ;;  %v108_v34 = vld [vmem:[#allocation4 + $0xa8] sm:$0xff]  ;;  %v2139_v35 = vcombine.high %v112_v25, %v116_v28  ;;  %v2138_v39 = vcombine.low %v112_v25, %v116_v28 }
  0x45   :  { %293 = vmatprep.subr.bf16.mxu1 %v2129_v7  ;;  %v2121_v11 = vcombine.high %v95_v8, %v99_v9  ;;  %v87_v12 = vld [vmem:[#allocation4] sm:$0xff]  ;;  %v2120_v23 = vcombine.low %v95_v8, %v99_v9  ;;  %375 = vmatprep.subr.bf16.mxu0 %v2133_v20  ;;  %v2125_v29 = vcombine.high %v97_v21, %v101_v22  ;;  %v89_v30 = vld [vmem:[#allocation4 + $0x10] sm:$0xff]  ;;  %v96_v40 = vld [vmem:[#allocation4 + $0x48] sm:$0xff] }
  0x46   :  { %v91_v15 = vld [vmem:[#allocation4 + $0x20] sm:$0xff]  ;;  %v93_v31 = vld [vmem:[#allocation4 + $0x30] sm:$0xff]  ;;  %v2124_v36 = vcombine.low %v97_v21, %v101_v22  ;;  %v100_v41 = vld [vmem:[#allocation4 + $0x68] sm:$0xff]  ;;  %v2131_v42 = vcombine.high %v104_v33, %v108_v34  ;;  %v2130_v44 = vcombine.low %v104_v33, %v108_v34 }
  0x47   :  { %v2113_v24 = vcombine.high %v87_v12, %v91_v15  ;;  %v2112_v32 = vcombine.low %v87_v12, %v91_v15  ;;  %v2117_v37 = vcombine.high %v89_v30, %v93_v31  ;;  %v2116_v43 = vcombine.low %v89_v30, %v93_v31  ;;  %v88_v45 = vld [vmem:[#allocation4 + $0x8] sm:$0xff]  ;;  %v114_v49 = vld [vmem:[#allocation4 + $0xd8] sm:$0xff] }
  0x48   :  { %294 = vmatpush1.bf16.msra.mxu1 %v2128_v10  ;;  %376 = vmatpush1.bf16.msra.mxu0 %v2132_v26  ;;  %v92_v46 = vld [vmem:[#allocation4 + $0x28] sm:$0xff]  ;;  %v2123_v47 = vcombine.high %v96_v40, %v100_v41  ;;  %v2122_v48 = vcombine.low %v96_v40, %v100_v41  ;;  %v118_v50 = vld [vmem:[#allocation4 + $0xf8] sm:$0xff] }
  0x49   :  { %295 = vmatprep.subr.bf16.mxu1 %v2121_v11  ;;  %377 = vmatprep.subr.bf16.mxu0 %v2125_v29  ;;  %v2115_v51 = vcombine.high %v88_v45, %v92_v46  ;;  %v2114_v52 = vcombine.low %v88_v45, %v92_v46  ;;  %v106_v53 = vld [vmem:[#allocation4 + $0x98] sm:$0xff]  ;;  %v2143_v55 = vcombine.high %v114_v49, %v118_v50  ;;  %v2338_v8 = vld [vmem:[#allocation6 + $0x164] ss:$8 sps:$4 sm:$0xff]   ;;  %v2333_v9 = vld [vmem:[#allocation6 + $0x60] ss:$8 sps:$4 sm:$0xff]  }
  0x4a   :  { %v110_v54 = vld [vmem:[#allocation4 + $0xb8] sm:$0xff]  ;;  %v2142_v56 = vcombine.low %v114_v49, %v118_v50  ;;  %v2336_v10 = vld [vmem:[#allocation6 + $0x160] ss:$8 sps:$4 sm:$0xff]   ;;  %v2347_v15 = vld [vmem:[#allocation6 + $0x44] ss:$8 sps:$4 sm:$0xff]  }
  0x4b   :  { %v98_v57 = vld [vmem:[#allocation4 + $0x58] sm:$0xff]  ;;  %v2135_v59 = vcombine.high %v106_v53, %v110_v54  ;;  %v2134_v60 = vcombine.low %v106_v53, %v110_v54  ;;  %v2350_v16 = vld [vmem:[#allocation6 + $0x144] ss:$8 sps:$4 sm:$0xff]   ;;  %v2345_v17 = vld [vmem:[#allocation6 + $0x40] ss:$8 sps:$4 sm:$0xff]  }
  0x4c   :  { %296 = vmatpush1.bf16.msra.mxu1 %v2120_v23  ;;  %378 = vmatpush1.bf16.msra.mxu0 %v2124_v36  ;;  %v102_v58 = vld [vmem:[#allocation4 + $0x78] sm:$0xff]  ;;  %v2348_v18 = vld [vmem:[#allocation6 + $0x140] ss:$8 sps:$4 sm:$0xff]   ;;  %v2359_v23 = vld [vmem:[#allocation6 + $0x24] ss:$8 sps:$4 sm:$0xff]  }
  0x4d   :  { %297 = vmatprep.subr.bf16.mxu1 %v2113_v24  ;;  %379 = vmatprep.subr.bf16.mxu0 %v2117_v37  ;;  %v90_v61 = vld [vmem:[#allocation4 + $0x18] sm:$0xff]  ;;  %v2127_v63 = vcombine.high %v98_v57, %v102_v58  ;;  %v2126_v1 = vcombine.low %v98_v57, %v102_v58  ;;  %v2362_v24 = vld [vmem:[#allocation6 + $0x124] ss:$8 sps:$4 sm:$0xff]   ;;  %v2357_v25 = vld [vmem:[#allocation6 + $0x20] ss:$8 sps:$4 sm:$0xff]  }
  0x4e   :  { %v94_v62 = vld [vmem:[#allocation4 + $0x38] sm:$0xff]  ;;  %v2360_v26 = vld [vmem:[#allocation6 + $0x120] ss:$8 sps:$4 sm:$0xff]   ;;  %v2371_v31 = vld [vmem:[#allocation6 + $0x4] ss:$8 sps:$4 sm:$0xff]  }
  0x4f   :  { %v2119_v2 = vcombine.high %v90_v61, %v94_v62  ;;  %v2118_v3 = vcombine.low %v90_v61, %v94_v62  ;;  %v2329_v4 = vld [vmem:[#allocation6 + $0x74] ss:$8 sps:$4 sm:$0xff]   ;;  %v2327_v6 = vld [vmem:[#allocation6 + $0x70] ss:$8 sps:$4 sm:$0xff]   ;;  %v2369_v33 = vld [vmem:[#allocation6] ss:$8 sps:$4 sm:$0xff]  }
  0x50   :  { %298 = vmatpush1.bf16.msra.mxu1 %v2112_v32  ;;  %380 = vmatpush1.bf16.msra.mxu0 %v2116_v43  ;;  %v2332_v5 = vld [vmem:[#allocation6 + $0x174] ss:$8 sps:$4 sm:$0xff]   ;;  %v2330_v7 = vld [vmem:[#allocation6 + $0x170] ss:$8 sps:$4 sm:$0xff]   ;;  %v2374_v32 = vld [vmem:[#allocation6 + $0x104] ss:$8 sps:$4 sm:$0xff]  }
  0x51   :  { %332 = vmatprep.subr.bf16.mxu1 %v2139_v35  ;;  %1623 = vmatprep.subr.bf16.mxu0 %v2329_v4  ;;  %v2341_v11 = vld [vmem:[#allocation6 + $0x54] ss:$8 sps:$4 sm:$0xff]   ;;  %v2339_v13 = vld [vmem:[#allocation6 + $0x50] ss:$8 sps:$4 sm:$0xff]   ;;  %v2372_v34 = vld [vmem:[#allocation6 + $0x100] ss:$8 sps:$4 sm:$0xff]  }
  0x52   :  { %v2344_v12 = vld [vmem:[#allocation6 + $0x154] ss:$8 sps:$4 sm:$0xff]   ;;  %v2342_v14 = vld [vmem:[#allocation6 + $0x150] ss:$8 sps:$4 sm:$0xff]   ;;  %v2386_v40 = vld [vmem:[#allocation6 + $0x1e4] ss:$8 sps:$4 sm:$0xff]  }
  0x53   :  { %2144 = vmatmul.mubr.msk.bf16.vlgmr.msra.gmra.mxu1 %vm279_vm0, %v86_v38  ;;  %2146 = vmatmul.mubr.msk.bf16.vlgmr.msra.gmra.mxu0 %vm279_vm0, %v86_v38  ;;  %v2353_v19 = vld [vmem:[#allocation6 + $0x34] ss:$8 sps:$4 sm:$0xff]   ;;  %v2351_v21 = vld [vmem:[#allocation6 + $0x30] ss:$8 sps:$4 sm:$0xff]   ;;  %v2381_v41 = vld [vmem:[#allocation6 + $0xe0] ss:$8 sps:$4 sm:$0xff]  }
  0x54   :  { %333 = vmatpush1.bf16.msra.mxu1 %v2138_v39  ;;  %356 = vmatprep.mubr.bf16.mxu1 %v2674_v0  ;;  %v2356_v20 = vld [vmem:[#allocation6 + $0x134] ss:$8 sps:$4 sm:$0xff]   ;;  %v2354_v22 = vld [vmem:[#allocation6 + $0x130] ss:$8 sps:$4 sm:$0xff]   ;;  %v2383_v39 = vld [vmem:[#allocation6 + $0xe4] ss:$8 sps:$4 sm:$0xff]  }
  0x55   :  { %334 = vmatprep.subr.bf16.mxu1 %v2131_v42  ;;  %1624 = vmatpush1.bf16.msra.mxu0 %v2327_v6  ;;  %v2365_v27 = vld [vmem:[#allocation6 + $0x14] ss:$8 sps:$4 sm:$0xff]   ;;  %v2363_v29 = vld [vmem:[#allocation6 + $0x10] ss:$8 sps:$4 sm:$0xff]   ;;  %v2384_v42 = vld [vmem:[#allocation6 + $0x1e0] ss:$8 sps:$4 sm:$0xff]  }
  0x56   :  { %v2368_v28 = vld [vmem:[#allocation6 + $0x114] ss:$8 sps:$4 sm:$0xff]   ;;  %v2366_v30 = vld [vmem:[#allocation6 + $0x110] ss:$8 sps:$4 sm:$0xff]   ;;  %v2393_v49 = vld [vmem:[#allocation6 + $0xc0] ss:$8 sps:$4 sm:$0xff]  }
  0x57   :  { %v2377_v35 = vld [vmem:[#allocation6 + $0xf4] ss:$8 sps:$4 sm:$0xff]   ;;  %v2375_v37 = vld [vmem:[#allocation6 + $0xf0] ss:$8 sps:$4 sm:$0xff]   ;;  %v2396_v50 = vld [vmem:[#allocation6 + $0x1c0] ss:$8 sps:$4 sm:$0xff]  }
  0x58   :  { %335 = vmatpush1.bf16.msra.mxu1 %v2130_v44  ;;  %v2380_v36 = vld [vmem:[#allocation6 + $0x1f4] ss:$8 sps:$4 sm:$0xff]   ;;  %v2387_v45 = vld [vmem:[#allocation6 + $0xd0] ss:$8 sps:$4 sm:$0xff]   ;;  %v2408_v57 = vld [vmem:[#allocation6 + $0x1a0] ss:$8 sps:$4 sm:$0xff]  }
  0x59   :  { %336 = vmatprep.subr.bf16.mxu1 %v2123_v47  ;;  %v2389_v43 = vld [vmem:[#allocation6 + $0xd4] ss:$8 sps:$4 sm:$0xff]   ;;  %v2390_v46 = vld [vmem:[#allocation6 + $0x1d0] ss:$8 sps:$4 sm:$0xff]   ;;  %v2395_v47 = vld [vmem:[#allocation6 + $0xc4] ss:$8 sps:$4 sm:$0xff]  }
  0x5a   :  { %v2392_v44 = vld [vmem:[#allocation6 + $0x1d4] ss:$8 sps:$4 sm:$0xff]   ;;  %v2399_v53 = vld [vmem:[#allocation6 + $0xb0] ss:$8 sps:$4 sm:$0xff]   ;;  %v2410_v58 = vld [vmem:[#allocation6 + $0x1a4] ss:$8 sps:$4 sm:$0xff]  }
  0x5b   :  { %v2402_v54 = vld [vmem:[#allocation6 + $0x1b0] ss:$8 sps:$4 sm:$0xff]   ;;  %v2425_v4 = vld [vmem:[#allocation6 + $0x274] ss:$8 sps:$4 sm:$0xff]  }
  0x5c   :  { %337 = vmatpush1.bf16.msra.mxu1 %v2122_v48  ;;  %v2398_v48 = vld [vmem:[#allocation6 + $0x1c4] ss:$8 sps:$4 sm:$0xff]   ;;  %v2411_v61 = vld [vmem:[#allocation6 + $0x90] ss:$8 sps:$4 sm:$0xff]  }
  0x5d   :  { %338 = vmatprep.subr.bf16.mxu1 %v2115_v51  ;;  %v2401_v51 = vld [vmem:[#allocation6 + $0xb4] ss:$8 sps:$4 sm:$0xff]   ;;  %v2414_v62 = vld [vmem:[#allocation6 + $0x190] ss:$8 sps:$4 sm:$0xff]  }
  0x60   :  { %339 = vmatpush1.bf16.msra.mxu1 %v2114_v52  ;;  %v2404_v52 = vld [vmem:[#allocation6 + $0x1b4] ss:$8 sps:$4 sm:$0xff]  }
  0x61   :  { %414 = vmatprep.subr.bf16.mxu1 %v2143_v55  ;;  %v2405_v55 = vld [vmem:[#allocation6 + $0xa0] ss:$8 sps:$4 sm:$0xff]  }
  0x63   :  { %2145 = vmatmul.mubr.msk.bf16.vlgmr.msra.gmra.mxu1 %vm279_vm0, %v86_v38 }
  0x64   :  { %415 = vmatpush1.bf16.msra.mxu1 %v2142_v56  ;;  %438 = vmatprep.mubr.bf16.mxu1 %v2674_v0  ;;  %v2335_v0 = vld [vmem:[#allocation6 + $0x64] ss:$8 sps:$4 sm:$0xff]  }
  0x65   :  { %416 = vmatprep.subr.bf16.mxu1 %v2135_v59  ;;  %1625 = vmatprep.subr.bf16.mxu0 %v2335_v0  ;;  %v2407_v56 = vld [vmem:[#allocation6 + $0xa4] ss:$8 sps:$4 sm:$0xff]   ;;  %v2413_v59 = vld [vmem:[#allocation6 + $0x94] ss:$8 sps:$4 sm:$0xff]  }
  0x66   :  { %1626 = vmatpush1.bf16.msra.mxu0 %v2333_v9 }
  0x67   :  { %1627 = vmatprep.subr.bf16.mxu0 %v2341_v11 }
  0x68   :  { %417 = vmatpush1.bf16.msra.mxu1 %v2134_v60  ;;  %v2416_v60 = vld [vmem:[#allocation6 + $0x194] ss:$8 sps:$4 sm:$0xff]  }
  0x69   :  { %418 = vmatprep.subr.bf16.mxu1 %v2127_v63  ;;  %v2419_v63 = vld [vmem:[#allocation6 + $0x84] ss:$8 sps:$4 sm:$0xff]  }
  0x6a   :  { %1628 = vmatpush1.bf16.msra.mxu0 %v2339_v13 }
  0x6b   :  { %1629 = vmatprep.subr.bf16.mxu0 %v2347_v15 }
  0x6c   :  { %419 = vmatpush1.bf16.msra.mxu1 %v2126_v1  ;;  %v2422_v1 = vld [vmem:[#allocation6 + $0x184] ss:$8 sps:$4 sm:$0xff]  }
  0x6d   :  { %420 = vmatprep.subr.bf16.mxu1 %v2119_v2  ;;  %v2417_v2 = vld [vmem:[#allocation6 + $0x80] ss:$8 sps:$4 sm:$0xff]  }
  0x6e   :  { %1630 = vmatpush1.bf16.msra.mxu0 %v2345_v17 }
  0x6f   :  { %1631 = vmatprep.subr.bf16.mxu0 %v2353_v19 }
  0x70   :  { %421 = vmatpush1.bf16.msra.mxu1 %v2118_v3  ;;  %v2420_v3 = vld [vmem:[#allocation6 + $0x180] ss:$8 sps:$4 sm:$0xff]  }
  0x71   :  { %1664 = vmatprep.subr.bf16.mxu1 %v2332_v5  ;;  %v2428_v5 = vld [vmem:[#allocation6 + $0x374] ss:$8 sps:$4 sm:$0xff]  }
  0x72   :  { %1632 = vmatpush1.bf16.msra.mxu0 %v2351_v21 }
  0x73   :  { %2147 = vmatmul.mubr.msk.bf16.vlgmr.msra.gmra.mxu1 %vm279_vm0, %v86_v38  ;;  %1633 = vmatprep.subr.bf16.mxu0 %v2359_v23  ;;  %v2378_v38 = vld [vmem:[#allocation6 + $0x1f0] ss:$8 sps:$4 sm:$0xff]  }
  0x74   :  { %1665 = vmatpush1.bf16.msra.mxu1 %v2330_v7 }
  0x75   :  { %1666 = vmatprep.subr.bf16.mxu1 %v2338_v8 }
  0x76   :  { %1634 = vmatpush1.bf16.msra.mxu0 %v2357_v25 }
  0x77   :  { %1635 = vmatprep.subr.bf16.mxu0 %v2365_v27 }
  0x78   :  { %1667 = vmatpush1.bf16.msra.mxu1 %v2336_v10 }
  0x79   :  { %1668 = vmatprep.subr.bf16.mxu1 %v2344_v12 }
  0x7a   :  { %1636 = vmatpush1.bf16.msra.mxu0 %v2363_v29 }
  0x7b   :  { %1637 = vmatprep.subr.bf16.mxu0 %v2371_v31 }
  0x7c   :  { %1669 = vmatpush1.bf16.msra.mxu1 %v2342_v14 }
  0x7d   :  { %1670 = vmatprep.subr.bf16.mxu1 %v2350_v16 }
  0x7e   :  { %1638 = vmatpush1.bf16.msra.mxu0 %v2369_v33 }
  0x7f   :  { %1639 = vmatprep.subr.bf16.mxu0 %v2377_v35 }
  0x80   :  { %1671 = vmatpush1.bf16.msra.mxu1 %v2348_v18 }
  0x81   :  { %1672 = vmatprep.subr.bf16.mxu1 %v2356_v20 }
  0x82   :  { %1640 = vmatpush2.bf16.msra.mxu0 %v2375_v37 }
  0x83   :  { %1641 = vmatprep.subr.bf16.mxu0 %v2383_v39 }
  0x84   :  { %1673 = vmatpush1.bf16.msra.mxu1 %v2354_v22 }
  0x85   :  { %1674 = vmatprep.subr.bf16.mxu1 %v2362_v24 }
  0x86   :  { %1642 = vmatpush2.bf16.msra.mxu0 %v2381_v41 }
  0x87   :  { %1643 = vmatprep.subr.bf16.mxu0 %v2389_v43 }
  0x88   :  { %1675 = vmatpush1.bf16.msra.mxu1 %v2360_v26 }
  0x89   :  { %1676 = vmatprep.subr.bf16.mxu1 %v2368_v28 }
  0x8a   :  { %1644 = vmatpush2.bf16.msra.mxu0 %v2387_v45 }
  0x8b   :  { %1645 = vmatprep.subr.bf16.mxu0 %v2395_v47 }
  0x8c   :  { %1677 = vmatpush1.bf16.msra.mxu1 %v2366_v30 }
  0x8d   :  { %1678 = vmatprep.subr.bf16.mxu1 %v2374_v32 }
  0x8e   :  { %1646 = vmatpush2.bf16.msra.mxu0 %v2393_v49 }
  0x8f   :  { %1647 = vmatprep.subr.bf16.mxu0 %v2401_v51 }
  0x90   :  { %1679 = vmatpush1.bf16.msra.mxu1 %v2372_v34 }
  0x91   :  { %1680 = vmatprep.subr.bf16.mxu1 %v2380_v36 }
  0x92   :  { %1648 = vmatpush2.bf16.msra.mxu0 %v2399_v53 }
  0x93   :  { %1649 = vmatprep.subr.bf16.mxu0 %v2407_v56 }
  0x94   :  { %1681 = vmatpush2.bf16.msra.mxu1 %v2378_v38 }
  0x95   :  { %1682 = vmatprep.subr.bf16.mxu1 %v2386_v40 }
  0x96   :  { %1650 = vmatpush2.bf16.msra.mxu0 %v2405_v55 }
  0x97   :  { %1651 = vmatprep.subr.bf16.mxu0 %v2413_v59 }
  0x98   :  { %1683 = vmatpush2.bf16.msra.mxu1 %v2384_v42 }
  0x99   :  { %1684 = vmatprep.subr.bf16.mxu1 %v2392_v44 }
  0x9a   :  { %1652 = vmatpush2.bf16.msra.mxu0 %v2411_v61 }
  0x9b   :  { %1653 = vmatprep.subr.bf16.mxu0 %v2419_v63 }
  0x9c   :  { %1685 = vmatpush2.bf16.msra.mxu1 %v2390_v46 }
  0x9d   :  { %1686 = vmatprep.subr.bf16.mxu1 %v2398_v48 }
  0x9e   :  { %1654 = vmatpush2.bf16.msra.mxu0 %v2417_v2 }
  0x9f   :  { %1705 = vmatprep.subr.bf16.mxu0 %v2425_v4 }
  0xa0   :  { %1687 = vmatpush2.bf16.msra.mxu1 %v2396_v50 }
  0xa1   :  { %1688 = vmatprep.subr.bf16.mxu1 %v2404_v52 }
  0xa4   :  { %1689 = vmatpush2.bf16.msra.mxu1 %v2402_v54 }
  0xa5   :  { %1690 = vmatprep.subr.bf16.mxu1 %v2410_v58 }
  0xa8   :  { %1691 = vmatpush2.bf16.msra.mxu1 %v2408_v57 }
  0xa9   :  { %1692 = vmatprep.subr.bf16.mxu1 %v2416_v60 }
  0xac   :  { %1693 = vmatpush2.bf16.msra.mxu1 %v2414_v62 }
  0xad   :  { %1694 = vmatprep.subr.bf16.mxu1 %v2422_v1 }
  0xb0   :  { %1695 = vmatpush2.bf16.msra.mxu1 %v2420_v3 }
  0xb1   :  { %1746 = vmatprep.subr.bf16.mxu1 %v2428_v5 }
 0x113   :  { %v2729_v6 = vpop.f32.mrf.mxu1  ;;  %v2740_v15 = vpop.f32.mrf.mxu0 }
 0x114   :  { %v454_v7 = vrot.slane %v2729_v6, 4  ;;  %v511_v0 = vmul.f32 %v2729_v6, %v2729_v6  ;;  %v478_v18 = vrot.slane %v2740_v15, 4  ;;  %v515_v21 = vmul.f32 %v2740_v15, %v2740_v15 }
 0x115   :  { %v2734_v8 = vpop.f32.mrf.mxu1  ;;  %v2743_v19 = vpop.f32.mrf.mxu0 }
 0x116   :  { %v455_v9 = vadd.f32 %v454_v7, %v2729_v6  ;;  %v519_v10 = vrot.slane %v511_v0, 4  ;;  %v460_v11 = vrot.slane %v2734_v8, 4  ;;  %v512_v14 = vmul.f32 %v2734_v8, %v2734_v8 }
 0x117   :  { %v321_v12 = vpop.f32.mrf.mxu1  ;;  %v403_v24 = vpop.f32.mrf.mxu0  ;;  %v484_v25 = vrot.slane %v2743_v19, 4  ;;  %v516_v26 = vmul.f32 %v2743_v19, %v2743_v19  ;;  %v479_v28 = vadd.f32 %v478_v18, %v2740_v15  ;;  %v543_v31 = vrot.slane %v515_v21, 4 }
 0x118   :  { %v456_v13 = vrot.slane %v455_v9, 2  ;;  %v520_v17 = vadd.f32 %v519_v10, %v511_v0  ;;  %v461_v20 = vadd.f32 %v460_v11, %v2734_v8  ;;  %v525_v23 = vrot.slane %v512_v14, 4 }
 0x119   :  { %v322_v16 = vpop.f32.mrf.mxu1  ;;  %v404_v29 = vpop.f32.mrf.mxu0  ;;  %v485_v34 = vadd.f32 %v484_v25, %v2743_v19  ;;  %v549_v35 = vrot.slane %v516_v26, 4  ;;  %v480_v37 = vrot.slane %v479_v28, 2  ;;  %v544_v40 = vadd.f32 %v543_v31, %v515_v21 }
 0x11a   :  { %v457_v22 = vadd.f32 %v456_v13, %v455_v9  ;;  %v521_v27 = vrot.slane %v520_v17, 2  ;;  %v462_v30 = vrot.slane %v461_v20, 2  ;;  %v526_v33 = vadd.f32 %v525_v23, %v512_v14 }
 0x11b   :  { %v486_v46 = vrot.slane %v485_v34, 2  ;;  %v550_v47 = vadd.f32 %v549_v35, %v516_v26  ;;  %v481_v51 = vadd.f32 %v480_v37, %v479_v28  ;;  %v545_v56 = vrot.slane %v544_v40, 2 }
 0x11c   :  { %v458_v32 = vrot.slane %v457_v22, 1  ;;  %v522_v36 = vadd.f32 %v521_v27, %v520_v17  ;;  %v463_v38 = vadd.f32 %v462_v30, %v461_v20  ;;  %v527_v42 = vrot.slane %v526_v33, 2 }
 0x11d   :  { %v487_v1 = vadd.f32 %v486_v46, %v485_v34  ;;  %v551_v2 = vrot.slane %v550_v47, 2  ;;  %v482_v7 = vrot.slane %v481_v51, 1  ;;  %v546_v10 = vadd.f32 %v545_v56, %v544_v40 }
 0x11e   :  { %v459_v41 = vadd.f32 %v458_v32, %v457_v22  ;;  %v523_v48 = vrot.slane %v522_v36, 1  ;;  %v464_v52 = vrot.slane %v463_v38, 1  ;;  %v528_v58 = vadd.f32 %v527_v42, %v526_v33 }
 0x11f   :  { %v488_v18 = vrot.slane %v487_v1, 1  ;;  %v552_v20 = vadd.f32 %v551_v2, %v550_v47  ;;  %v483_v24 = vadd.f32 %v482_v7, %v481_v51  ;;  %v547_v28 = vrot.slane %v546_v10, 1 }
 0x120   :  { %v2764_v57 = vmul.f32 0.125, %v459_v41  ;;  %v524_v3 = vadd.f32 %v523_v48, %v522_v36  ;;  %v465_v11 = vadd.f32 %v464_v52, %v463_v38  ;;  %v529_v12 = vrot.slane %v528_v58, 1 }
 0x121   :  { %v489_v33 = vadd.f32 %v488_v18, %v487_v1  ;;  %v553_v34 = vrot.slane %v552_v20, 1  ;;  %v2773_v37 = vmul.f32 0.125, %v483_v24  ;;  %v548_v42 = vadd.f32 %v547_v28, %v546_v10 }
 0x122   :  { %v567_v21 = vmul.f32 0.125, %v524_v3  ;;  %v575_v22 = vmul.f32 %v2764_v57, %v2764_v57  ;;  %v2769_v29 = vmul.f32 0.125, %v465_v11  ;;  %v530_v30 = vadd.f32 %v529_v12, %v528_v58 }
 0x123   :  { %v2753_v39 = vpop.f32.mrf.mxu1  ;;  %v2786_v51 = vmul.f32 0.125, %v489_v33  ;;  %v554_v52 = vadd.f32 %v553_v34, %v552_v20 }
 0x124   :  { %v466_v43 = vrot.slane %v2753_v39, 4  ;;  %v513_v44 = vmul.f32 %v2753_v39, %v2753_v39  ;;  %v583_v35 = vsub.f32 %v567_v21, %v575_v22  ;;  %v576_v46 = vmul.f32 %v2769_v29, %v2769_v29 }
 0x125   :  { %v2758_v45 = vpop.f32.mrf.mxu1  ;;  %v572_v7 = vmul.f32 0.125, %v554_v52 }
 0x126   :  { %v467_v49 = vadd.f32 %v466_v43, %v2753_v39  ;;  %v472_v50 = vrot.slane %v2758_v45, 4  ;;  %v531_v53 = vrot.slane %v513_v44, 4  ;;  %v514_v54 = vmul.f32 %v2758_v45, %v2758_v45 }
 0x127   :  { %v362_v55 = vpop.f32.mrf.mxu1 }
 0x128   :  { %v468_v59 = vrot.slane %v467_v49, 2  ;;  %v473_v60 = vadd.f32 %v472_v50, %v2758_v45  ;;  %v532_v61 = vadd.f32 %v531_v53, %v513_v44  ;;  %v537_v62 = vrot.slane %v514_v54, 4 }
 0x129   :  { %v363_v63 = vpop.f32.mrf.mxu1  ;;  %v568_v44 = vmul.f32 0.125, %v530_v30 }
 0x12a   :  { %v469_v4 = vadd.f32 %v468_v59, %v467_v49  ;;  %v474_v5 = vrot.slane %v473_v60, 2  ;;  %v533_v0 = vrot.slane %v532_v61, 2  ;;  %v538_v9 = vadd.f32 %v537_v62, %v514_v54 }
 0x12b   :  { %v579_v62 = vmul.f32 %v2773_v37, %v2773_v37  ;;  %v584_v10 = vsub.f32 %v568_v44, %v576_v46 }
 0x12c   :  { %v470_v13 = vrot.slane %v469_v4, 1  ;;  %v475_v14 = vadd.f32 %v474_v5, %v473_v60  ;;  %v534_v16 = vadd.f32 %v533_v0, %v532_v61  ;;  %v539_v17 = vrot.slane %v538_v9, 2 }
 0x12d   :  { %v571_v61 = vmul.f32 0.125, %v548_v42  ;;  %v580_v0 = vmul.f32 %v2786_v51, %v2786_v51 }
 0x12e   :  { %v476_v23 = vrot.slane %v475_v14, 1  ;;  %v471_v25 = vadd.f32 %v470_v13, %v469_v4  ;;  %v535_v26 = vrot.slane %v534_v16, 1  ;;  %v540_v27 = vadd.f32 %v539_v17, %v538_v9 }
 0x12f   :  { %v587_v18 = vsub.f32 %v571_v61, %v579_v62  ;;  %v588_v24 = vsub.f32 %v572_v7, %v580_v0 }
 0x130   :  { %v477_v31 = vadd.f32 %v476_v23, %v475_v14  ;;  %v541_v32 = vrot.slane %v540_v27, 1  ;;  %v2775_v38 = vmul.f32 0.125, %v471_v25  ;;  %v536_v40 = vadd.f32 %v535_v26, %v534_v16 }
 0x131   :  { %v591_v14 = vmax.f32 %v583_v35, 0.0  ;;  %v592_v26 = vmax.f32 %v584_v10, 0.0  ;;  %v595_v34 = vmax.f32 %v587_v18, 0.0  ;;  %v596_v44 = vmax.f32 %v588_v24, 0.0 }
 0x132   :  { %v2771_v36 = vmul.f32 0.125, %v477_v31  ;;  %v542_v41 = vadd.f32 %v541_v32, %v540_v27  ;;  %v569_v59 = vmul.f32 0.125, %v536_v40  ;;  %v577_v60 = vmul.f32 %v2775_v38, %v2775_v38 }
 0x133   :  { %v2777_v43 = vpop.f32.mrf.mxu1  ;;  %v599_v31 = vadd.f32 1e-05, %v591_v14 }
 0x134   :  { %v490_v47 = vrot.slane %v2777_v43, 4  ;;  %v517_v48 = vmul.f32 %v2777_v43, %v2777_v43  ;;  %v570_v49 = vmul.f32 0.125, %v542_v41  ;;  %v578_v50 = vmul.f32 %v2771_v36, %v2771_v36 }
 0x135   :  { %v2788_v53 = vpop.f32.mrf.mxu1  ;;  %v585_v16 = vsub.f32 %v569_v59, %v577_v60  ;;  %2535 = vrsqrt.f32 %v599_v31  ;;  %v604_v59 = vadd.f32 1e-05, %v596_v44  ;;  %v448_v31 = vld [vmem:[#allocation9] ss:$8 sm:$0xf0] }
 0x136   :  { %v491_v54 = vadd.f32 %v490_v47, %v2777_v43  ;;  %v555_v55 = vrot.slane %v517_v48, 4  ;;  %v496_v56 = vrot.slane %v2788_v53, 4  ;;  %v518_v58 = vmul.f32 %v2788_v53, %v2788_v53 }
 0x137   :  { %v444_v63 = vpop.f32.mrf.mxu1  ;;  %v586_v5 = vsub.f32 %v570_v49, %v578_v50  ;;  %v593_v32 = vmax.f32 %v585_v16, 0.0  ;;  %v600_v47 = vadd.f32 1e-05, %v592_v26 }
 0x138   :  { %v492_v1 = vrot.slane %v491_v54, 2  ;;  %v556_v2 = vadd.f32 %v555_v55, %v517_v48  ;;  %v497_v3 = vadd.f32 %v496_v56, %v2788_v53  ;;  %v561_v4 = vrot.slane %v518_v58, 4 }
 0x139   :  { %v445_v9 = vpop.f32.mrf.mxu1  ;;  %v594_v23 = vmax.f32 %v586_v5, 0.0  ;;  %v601_v52 = vadd.f32 1e-05, %v593_v32  ;;  %v603_v55 = vadd.f32 1e-05, %v595_v34  ;;  %v630_v5 = vlaneseq }
 0x13a   :  { %v493_v11 = vadd.f32 %v492_v1, %v491_v54  ;;  %v557_v12 = vrot.slane %v556_v2, 2  ;;  %v498_v13 = vrot.slane %v497_v3, 2  ;;  %v562_v17 = vadd.f32 %v561_v4, %v518_v58 }
 0x13b   :  { %v602_v42 = vadd.f32 1e-05, %v594_v23 }
 0x13c   :  { %v494_v20 = vrot.slane %v493_v11, 1  ;;  %v558_v21 = vadd.f32 %v557_v12, %v556_v2  ;;  %v499_v22 = vadd.f32 %v498_v13, %v497_v3  ;;  %v563_v25 = vrot.slane %v562_v17, 2 }
 0x13d   :  { %2537 = vrsqrt.f32 %v602_v42  ;;  %v2675_v3 = vmov 1966171168  }
 0x13e   :  { %v495_v27 = vadd.f32 %v494_v20, %v493_v11  ;;  %v559_v28 = vrot.slane %v558_v21, 1  ;;  %v500_v30 = vrot.slane %v499_v22, 1  ;;  %v564_v33 = vadd.f32 %v563_v25, %v562_v17 }
 0x13f   :  { %2539 = vrsqrt.f32 %v600_v47  ;;  %v628_v4 = vunpack.c.l.s4 %v2675_v3  ;;  %v2809_v11 = vshrl.u32 %v630_v5, 7 }
 0x140   :  { %v2801_v40 = vmul.f32 0.125, %v495_v27  ;;  %v560_v35 = vadd.f32 %v559_v28, %v558_v21  ;;  %v501_v41 = vadd.f32 %v500_v30, %v499_v22  ;;  %v565_v46 = vrot.slane %v564_v33, 1  ;;  %v447_v30 = vld [vmem:[#allocation9] ss:$8 sm:$0xf] }
 0x141   :  { %2541 = vrsqrt.f32 %v601_v52  ;;  %v629_v10 = vunpack.c.0.s8 %v628_v4  ;;  %v449_v34 = vor.u32 %v448_v31, %v447_v30  ;;  %v697_v44 = vsub.s32 5, %v2809_v11 }
 0x142   :  { %v573_v48 = vmul.f32 0.125, %v560_v35  ;;  %v581_v49 = vmul.f32 %v2801_v40, %v2801_v40  ;;  %v2805_v50 = vmul.f32 0.125, %v501_v41  ;;  %v566_v54 = vadd.f32 %v565_v46, %v564_v33  ;;  %v2536_v7 = vpop.eup %2535 }
 0x143   :  { %2543 = vrsqrt.f32 %v603_v55  ;;  %v2812_v18 = vsub.s32 %v629_v10, %v2809_v11  ;;  %v693_v41 = vsub.s32 4, %v2809_v11  ;;  %v701_v46 = vsub.s32 6, %v2809_v11 }
 0x144   :  { %v589_v56 = vsub.f32 %v573_v48, %v581_v49  ;;  %v582_v58 = vmul.f32 %v2805_v50, %v2805_v50  ;;  %v574_v60 = vmul.f32 0.125, %v566_v54  ;;  %2545 = vrsqrt.f32 %v604_v59 }
 0x145   :  { %v705_v47 = vsub.s32 7, %v2809_v11  ;;  %v2825_v48 = vsub.s32 0, %v2809_v11  ;;  %v2828_v49 = vsub.s32 1, %v2809_v11  ;;  %v685_v52 = vsub.s32 2, %v2809_v11 }
 0x146   :  { %v597_v61 = vmax.f32 %v589_v56, 0.0  ;;  %v590_v62 = vsub.f32 %v574_v60, %v582_v58  ;;  %v689_v54 = vsub.s32 3, %v2809_v11 }
 0x148   :  { %v605_v63 = vadd.f32 1e-05, %v597_v61  ;;  %v598_v1 = vmax.f32 %v590_v62, 0.0 }
 0x14a   :  { %v606_v2 = vadd.f32 1e-05, %v598_v1  ;;  %2547 = vrsqrt.f32 %v605_v63  ;;  %v2538_v0 = vpop.eup %2537 }
 0x14c   :  { %2549 = vrsqrt.f32 %v606_v2  ;;  %v2540_v9 = vpop.eup %2539 }
 0x14d   :  { %v623_v17 = vcombine.low %v2536_v7, %v2540_v9 }
 0x14e   :  { %v2542_v12 = vpop.eup %2541 }
 0x14f   :  { %v624_v14 = vcombine.low %v2542_v12, %v2538_v0  ;;  %v633_v24 = vrot.slane %v623_v17, %v2812_v18  ;;  %v452_v17 = vld [vmem:[#allocation9 + $0x1] ss:$8 sm:$0xf0] }
 0x150   :  { %v2544_v13 = vpop.eup %2543 }
 0x151   :  { %v2546_v16 = vpop.eup %2545  ;;  %v640_v21 = vrot.slane %v624_v14, %v2812_v18 }
 0x152   :  { %v625_v22 = vcombine.low %v2544_v13, %v2546_v16 }
 0x153   :  { %v655_v26 = vcombine.low %v633_v24, %v640_v21 }
 0x154   :  { %v647_v27 = vrot.slane %v625_v22, %v2812_v18 }
 0x155   :  { %v663_v33 = vrot.slane %v655_v26, %v2812_v18 }
 0x157   :  { %v2548_v20 = vpop.eup %2547 }
 0x159   :  { %v2550_v23 = vpop.eup %2549 }
 0x15a   :  { %v626_v25 = vcombine.low %v2548_v20, %v2550_v23 }
 0x15c   :  { %v654_v28 = vrot.slane %v626_v25, %v2812_v18 }
 0x15e   :  { %v656_v32 = vcombine.low %v647_v27, %v654_v28 }
 0x160   :  { %v670_v35 = vrot.slane %v656_v32, %v2812_v18 }
 0x162   :  { %v671_v42 = vcombine.low %v663_v33, %v670_v35 }
 0x164   :  { %v673_v55 = vmul.f32 %v671_v42, %v449_v34 }
 0x166   :  { %v694_v56 = vrot.slane %v673_v55, %v693_v41  ;;  %v698_v58 = vrot.slane %v673_v55, %v697_v44  ;;  %v702_v59 = vrot.slane %v673_v55, %v701_v46  ;;  %v706_v60 = vrot.slane %v673_v55, %v705_v47 }
 0x167   :  { %v678_v61 = vrot.slane %v673_v55, %v2825_v48  ;;  %v682_v62 = vrot.slane %v673_v55, %v2828_v49  ;;  %v686_v63 = vrot.slane %v673_v55, %v685_v52  ;;  %v690_v1 = vrot.slane %v673_v55, %v689_v54 }
 0x168   :  { %v719_v2 = vmul.f32 %v694_v56, %v2773_v37  ;;  %v720_v3 = vmul.f32 %v698_v58, %v2786_v51  ;;  %v721_v4 = vmul.f32 %v702_v59, %v2801_v40  ;;  %v722_v5 = vmul.f32 %v706_v60, %v2805_v50 }
 0x169   :  { %v715_v7 = vmul.f32 %v678_v61, %v2764_v57  ;;  %v716_v0 = vmul.f32 %v682_v62, %v2769_v29  ;;  %v717_v9 = vmul.f32 %v686_v63, %v2775_v38  ;;  %v718_v12 = vmul.f32 %v690_v1, %v2771_v36  ;;  %v451_v29 = vld [vmem:[#allocation9 + $0x1] ss:$8 sm:$0xf] }
 0x16a   :  { %v733_v10 = vcombine.low %v719_v2, %v720_v3  ;;  %v734_v11 = vcombine.low %v721_v4, %v722_v5  ;;  %v788_v50 = vmul.f32 %v702_v59, %v2777_v43  ;;  %v453_v21 = vor.u32 %v452_v17, %v451_v29  ;;  %v2431_v2 = vld [vmem:[#allocation6 + $0x264] ss:$8 sps:$4 sm:$0xff]  }
 0x16b   :  { %v731_v13 = vcombine.low %v715_v7, %v716_v0  ;;  %v732_v51 = vcombine.low %v717_v9, %v718_v12  ;;  %v789_v23 = vmul.f32 %v706_v60, %v2788_v53  ;;  %v783_v25 = vmul.f32 %v682_v62, %v2734_v8  ;;  %v2434_v3 = vld [vmem:[#allocation6 + $0x364] ss:$8 sps:$4 sm:$0xff]   ;;  %v2429_v7 = vld [vmem:[#allocation6 + $0x260] ss:$8 sps:$4 sm:$0xff]   ;;  %v2437_v9 = vld [vmem:[#allocation6 + $0x254] ss:$8 sps:$4 sm:$0xff]  }
 0x16c   :  { %v755_v14 = vrot.slane %v733_v10, %v2812_v18  ;;  %v762_v37 = vrot.slane %v734_v11, %v2812_v18  ;;  %v785_v26 = vmul.f32 %v690_v1, %v2758_v45  ;;  %v782_v43 = vmul.f32 %v678_v61, %v2729_v6  ;;  %v2432_v0 = vld [vmem:[#allocation6 + $0x360] ss:$8 sps:$4 sm:$0xff]   ;;  %v2440_v10 = vld [vmem:[#allocation6 + $0x354] ss:$8 sps:$4 sm:$0xff]   ;;  %v2435_v11 = vld [vmem:[#allocation6 + $0x250] ss:$8 sps:$4 sm:$0xff]  }
 0x16d   :  { %v741_v40 = vrot.slane %v731_v13, %v2812_v18  ;;  %v748_v57 = vrot.slane %v732_v51, %v2812_v18  ;;  %v784_v27 = vmul.f32 %v686_v63, %v2753_v39  ;;  %v787_v28 = vmul.f32 %v698_v58, %v2743_v19  ;;  %v2438_v12 = vld [vmem:[#allocation6 + $0x350] ss:$8 sps:$4 sm:$0xff]   ;;  %v2443_v13 = vld [vmem:[#allocation6 + $0x244] ss:$8 sps:$4 sm:$0xff]   ;;  %v2444_v51 = vld [vmem:[#allocation6 + $0x340] ss:$8 sps:$4 sm:$0xff]  }
 0x16e   :  { %v764_v16 = vcombine.low %v755_v14, %v762_v37  ;;  %v786_v30 = vmul.f32 %v694_v56, %v2740_v15  ;;  %v2446_v14 = vld [vmem:[#allocation6 + $0x344] ss:$8 sps:$4 sm:$0xff]   ;;  %v2441_v37 = vld [vmem:[#allocation6 + $0x240] ss:$8 sps:$4 sm:$0xff]  }
 0x16f   :  { %v763_v20 = vcombine.low %v741_v40, %v748_v57  ;;  %v2449_v40 = vld [vmem:[#allocation6 + $0x234] ss:$8 sps:$4 sm:$0xff]   ;;  %v2450_v57 = vld [vmem:[#allocation6 + $0x330] ss:$8 sps:$4 sm:$0xff]   ;;  %v2455_v29 = vld [vmem:[#allocation6 + $0x224] ss:$8 sps:$4 sm:$0xff]  }
 0x170   :  { %v778_v38 = vrot.slane %v764_v16, %v2812_v18  ;;  %v2447_v16 = vld [vmem:[#allocation6 + $0x230] ss:$8 sps:$4 sm:$0xff]   ;;  %v2458_v17 = vld [vmem:[#allocation6 + $0x324] ss:$8 sps:$4 sm:$0xff]  }
 0x171   :  { %v771_v36 = vrot.slane %v763_v20, %v2812_v18  ;;  %v2456_v20 = vld [vmem:[#allocation6 + $0x320] ss:$8 sps:$4 sm:$0xff]  }
 0x173   :  { %v779_v22 = vcombine.low %v771_v36, %v778_v38  ;;  %v2453_v38 = vld [vmem:[#allocation6 + $0x220] ss:$8 sps:$4 sm:$0xff]   ;;  %v2464_v36 = vld [vmem:[#allocation6 + $0x314] ss:$8 sps:$4 sm:$0xff]  }
 0x175   :  { %v781_v24 = vsub.f32 %v453_v21, %v779_v22  ;;  %v2461_v21 = vld [vmem:[#allocation6 + $0x214] ss:$8 sps:$4 sm:$0xff]   ;;  %v2459_v22 = vld [vmem:[#allocation6 + $0x210] ss:$8 sps:$4 sm:$0xff]  }
 0x177   :  { %v798_v31 = vrot.slane %v781_v24, %v2828_v49  ;;  %v806_v32 = vrot.slane %v781_v24, %v689_v54  ;;  %v794_v33 = vrot.slane %v781_v24, %v2825_v48  ;;  %v802_v34 = vrot.slane %v781_v24, %v685_v52 }
 0x178   :  { %v814_v53 = vrot.slane %v781_v24, %v697_v44  ;;  %v822_v35 = vrot.slane %v781_v24, %v705_v47  ;;  %v810_v42 = vrot.slane %v781_v24, %v693_v41  ;;  %v818_v8 = vrot.slane %v781_v24, %v701_v46  ;;  %v2423_v41 = vld [vmem:[#allocation6 + $0x270] ss:$8 sps:$4 sm:$0xff]   ;;  %v2467_v24 = vld [vmem:[#allocation6 + $0x204] ss:$8 sps:$4 sm:$0xff]  }
 0x179   :  { %v832_v55 = vadd.f32 %v798_v31, %v783_v25  ;;  %v834_v45 = vadd.f32 %v806_v32, %v785_v26  ;;  %v831_v59 = vadd.f32 %v794_v33, %v782_v43  ;;  %v833_v6 = vadd.f32 %v802_v34, %v784_v27  ;;  %v2426_v46 = vld [vmem:[#allocation6 + $0x370] ss:$8 sps:$4 sm:$0xff]   ;;  %v2470_v25 = vld [vmem:[#allocation6 + $0x304] ss:$8 sps:$4 sm:$0xff]   ;;  %v2465_v26 = vld [vmem:[#allocation6 + $0x200] ss:$8 sps:$4 sm:$0xff]  }
 0x17a   :  { %v836_v60 = vadd.f32 %v814_v53, %v787_v28  ;;  %v838_v39 = vadd.f32 %v822_v35, %v789_v23  ;;  %v2858_v61 = vadd.f32 %v810_v42, %v786_v30  ;;  %v2860_v19 = vadd.f32 %v818_v8, %v788_v50  ;;  %v2452_v50 = vld [vmem:[#allocation6 + $0x334] ss:$8 sps:$4 sm:$0xff]   ;;  %v2462_v23 = vld [vmem:[#allocation6 + $0x310] ss:$8 sps:$4 sm:$0xff]   ;;  %v2468_v43 = vld [vmem:[#allocation6 + $0x300] ss:$8 sps:$4 sm:$0xff]  }
 0x17b   :  { %v840_v15 = vmax.f32 %v832_v55, 0.0  ;;  %v842_v56 = vmax.f32 %v834_v45, 0.0  ;;  %v839_v54 = vmax.f32 %v831_v59, 0.0  ;;  %v841_v58 = vmax.f32 %v833_v6, 0.0  ;;  %v2473_v27 = vld [vmem:[#allocation6 + $0x2f4] ss:$8 sps:$4 sm:$0xff]  }
 0x17c   :  { %v844_v62 = vmax.f32 %v836_v60, 0.0  ;;  %v846_v52 = vmax.f32 %v838_v39, 0.0  ;;  %v2476_v28 = vld [vmem:[#allocation6 + $0x3f4] ss:$8 sps:$4 sm:$0xff]   ;;  %v2471_v30 = vld [vmem:[#allocation6 + $0x2f0] ss:$8 sps:$4 sm:$0xff]  }
 0x17d   :  { %v848_v44 = vpack.c.bf16 %v840_v15, %v840_v15  ;;  %v850_v47 = vpack.c.bf16 %v842_v56, %v842_v56  ;;  %v847_v63 = vpack.c.bf16 %v839_v54, %v839_v54  ;;  %v849_v1 = vpack.c.bf16 %v841_v58, %v841_v58  ;;  %v2474_v31 = vld [vmem:[#allocation6 + $0x3f0] ss:$8 sps:$4 sm:$0xff]   ;;  %v2479_v32 = vld [vmem:[#allocation6 + $0x2e4] ss:$8 sps:$4 sm:$0xff]   ;;  %v2477_v34 = vld [vmem:[#allocation6 + $0x2e0] ss:$8 sps:$4 sm:$0xff]  }
 0x17e   :  { %v852_v4 = vpack.c.bf16 %v844_v62, %v844_v62  ;;  %v854_v5 = vpack.c.bf16 %v846_v52, %v846_v52  ;;  %v2482_v33 = vld [vmem:[#allocation6 + $0x3e4] ss:$8 sps:$4 sm:$0xff]   ;;  %v2480_v53 = vld [vmem:[#allocation6 + $0x3e0] ss:$8 sps:$4 sm:$0xff]   ;;  %v2485_v35 = vld [vmem:[#allocation6 + $0x2d4] ss:$8 sps:$4 sm:$0xff]  }
 0x17f   :  { %1655 = vmatprep.mubr.bf16.mxu0 %v848_v44  ;;  %1696 = vmatprep.mubr.bf16.mxu1 %v850_v47  ;;  %v2488_v42 = vld [vmem:[#allocation6 + $0x3d4] ss:$8 sps:$4 sm:$0xff]   ;;  %v2483_v8 = vld [vmem:[#allocation6 + $0x2d0] ss:$8 sps:$4 sm:$0xff]   ;;  %v2491_v45 = vld [vmem:[#allocation6 + $0x2c4] ss:$8 sps:$4 sm:$0xff]  }
 0x180   :  { %1656 = vmatmul.mubr.bf16.vlgmr.msra.gmra.mxu0 %v847_v63  ;;  %1697 = vmatmul.mubr.bf16.vlgmr.msra.gmra.mxu1 %v849_v1  ;;  %v2486_v55 = vld [vmem:[#allocation6 + $0x3d0] ss:$8 sps:$4 sm:$0xff]   ;;  %v2494_v59 = vld [vmem:[#allocation6 + $0x3c4] ss:$8 sps:$4 sm:$0xff]   ;;  %v2489_v6 = vld [vmem:[#allocation6 + $0x2c0] ss:$8 sps:$4 sm:$0xff]  }
 0x181   :  { %1706 = vmatpush1.bf16.msra.mxu0 %v2423_v41  ;;  %1747 = vmatpush1.bf16.msra.mxu1 %v2426_v46  ;;  %v2492_v60 = vld [vmem:[#allocation6 + $0x3c0] ss:$8 sps:$4 sm:$0xff]   ;;  %v2497_v39 = vld [vmem:[#allocation6 + $0x2b4] ss:$8 sps:$4 sm:$0xff]   ;;  %v2495_v56 = vld [vmem:[#allocation6 + $0x2b0] ss:$8 sps:$4 sm:$0xff]  }
 0x182   :  { %1737 = vmatprep.mubr.bf16.mxu0 %v852_v4  ;;  %1778 = vmatprep.mubr.bf16.mxu1 %v854_v5  ;;  %v2500_v15 = vld [vmem:[#allocation6 + $0x3b4] ss:$8 sps:$4 sm:$0xff]   ;;  %v2498_v54 = vld [vmem:[#allocation6 + $0x3b0] ss:$8 sps:$4 sm:$0xff]   ;;  %v2503_v58 = vld [vmem:[#allocation6 + $0x2a4] ss:$8 sps:$4 sm:$0xff]  }
 0x183   :  { %1707 = vmatprep.subr.bf16.mxu0 %v2431_v2  ;;  %1748 = vmatprep.subr.bf16.mxu1 %v2434_v3  ;;  %v2506_v62 = vld [vmem:[#allocation6 + $0x3a4] ss:$8 sps:$4 sm:$0xff]   ;;  %v2501_v52 = vld [vmem:[#allocation6 + $0x2a0] ss:$8 sps:$4 sm:$0xff]   ;;  %v2509_v47 = vld [vmem:[#allocation6 + $0x294] ss:$8 sps:$4 sm:$0xff]  }
 0x184   :  { %v2504_v44 = vld [vmem:[#allocation6 + $0x3a0] ss:$8 sps:$4 sm:$0xff]   ;;  %v2512_v41 = vld [vmem:[#allocation6 + $0x394] ss:$8 sps:$4 sm:$0xff]   ;;  %v2507_v46 = vld [vmem:[#allocation6 + $0x290] ss:$8 sps:$4 sm:$0xff]  }
 0x185   :  { %1708 = vmatpush1.bf16.msra.mxu0 %v2429_v7  ;;  %1749 = vmatpush1.bf16.msra.mxu1 %v2432_v0  ;;  %v2510_v63 = vld [vmem:[#allocation6 + $0x390] ss:$8 sps:$4 sm:$0xff]   ;;  %v2515_v1 = vld [vmem:[#allocation6 + $0x284] ss:$8 sps:$4 sm:$0xff]   ;;  %v2513_v3 = vld [vmem:[#allocation6 + $0x280] ss:$8 sps:$4 sm:$0xff]  }
 0x186   :  { %1709 = vmatprep.subr.bf16.mxu0 %v2437_v9  ;;  %1750 = vmatprep.subr.bf16.mxu1 %v2440_v10  ;;  %v2518_v2 = vld [vmem:[#allocation6 + $0x384] ss:$8 sps:$4 sm:$0xff]   ;;  %v2516_v4 = vld [vmem:[#allocation6 + $0x380] ss:$8 sps:$4 sm:$0xff]   ;;  %v843_v5 = vmax.f32 %v2858_v61, 0.0  ;;  %v845_v7 = vmax.f32 %v2860_v19, 0.0 }
 0x187   :  { %v2519_v10 = vld [vmem:[#allocation7 + $0x78] sm:$0xff]   ;;  %v2525_v61 = vld [vmem:[#allocation7 + $0x60] sm:$0xff]  }
 0x188   :  { %v851_v0 = vpack.c.bf16 %v843_v5, %v843_v5  ;;  %v853_v9 = vpack.c.bf16 %v845_v7, %v845_v7  ;;  %v2526_v19 = vld [vmem:[#allocation7 + $0x20] sm:$0xff]  }
 0x189   :  { %1710 = vmatpush1.bf16.msra.mxu0 %v2435_v11  ;;  %1751 = vmatpush1.bf16.msra.mxu1 %v2438_v12  ;;  %v2520_v11 = vld [vmem:[#allocation7 + $0x38] sm:$0xff]   ;;  %v2521_v12 = vld [vmem:[#allocation7 + $0x70] sm:$0xff]  }
 0x18a   :  { %1711 = vmatprep.subr.bf16.mxu0 %v2443_v13  ;;  %1752 = vmatprep.subr.bf16.mxu1 %v2446_v14  ;;  %v2522_v13 = vld [vmem:[#allocation7 + $0x30] sm:$0xff]   ;;  %v2523_v14 = vld [vmem:[#allocation7 + $0x68] sm:$0xff]  }
 0x18d   :  { %1712 = vmatpush1.bf16.msra.mxu0 %v2441_v37  ;;  %1753 = vmatpush1.bf16.msra.mxu1 %v2444_v51  ;;  %v2524_v37 = vld [vmem:[#allocation7 + $0x28] sm:$0xff]   ;;  %v2527_v51 = vld [vmem:[#allocation7 + $0x58] sm:$0xff]  }
 0x18e   :  { %1713 = vmatprep.subr.bf16.mxu0 %v2449_v40  ;;  %1754 = vmatprep.subr.bf16.mxu1 %v2452_v50  ;;  %v2528_v40 = vld [vmem:[#allocation7 + $0x18] sm:$0xff]   ;;  %v2529_v50 = vld [vmem:[#allocation7 + $0x50] sm:$0xff]  }
 0x191   :  { %1714 = vmatpush1.bf16.msra.mxu0 %v2447_v16  ;;  %1755 = vmatpush1.bf16.msra.mxu1 %v2450_v57  ;;  %v2530_v16 = vld [vmem:[#allocation7 + $0x10] sm:$0xff]   ;;  %v2531_v57 = vld [vmem:[#allocation7 + $0x48] sm:$0xff]  }
 0x192   :  { %1715 = vmatprep.subr.bf16.mxu0 %v2455_v29  ;;  %1756 = vmatprep.subr.bf16.mxu1 %v2458_v17  ;;  %v2532_v29 = vld [vmem:[#allocation7 + $0x8] sm:$0xff]   ;;  %v2533_v17 = vld [vmem:[#allocation7 + $0x40] sm:$0xff]  }
 0x195   :  { %1716 = vmatpush1.bf16.msra.mxu0 %v2453_v38  ;;  %1757 = vmatpush1.bf16.msra.mxu1 %v2456_v20  ;;  %v2534_v38 = vld [vmem:[#allocation7] sm:$0xff]  }
 0x196   :  { %1717 = vmatprep.subr.bf16.mxu0 %v2461_v21  ;;  %1758 = vmatprep.subr.bf16.mxu1 %v2464_v36 }
 0x199   :  { %1718 = vmatpush1.bf16.msra.mxu0 %v2459_v22  ;;  %1759 = vmatpush1.bf16.msra.mxu1 %v2462_v23 }
 0x19a   :  { %1719 = vmatprep.subr.bf16.mxu0 %v2467_v24  ;;  %1760 = vmatprep.subr.bf16.mxu1 %v2470_v25 }
 0x19d   :  { %1720 = vmatpush1.bf16.msra.mxu0 %v2465_v26  ;;  %1761 = vmatpush1.bf16.msra.mxu1 %v2468_v43 }
 0x19e   :  { %1721 = vmatprep.subr.bf16.mxu0 %v2473_v27  ;;  %1762 = vmatprep.subr.bf16.mxu1 %v2476_v28 }
 0x1a1   :  { %1722 = vmatpush2.bf16.msra.mxu0 %v2471_v30  ;;  %1763 = vmatpush2.bf16.msra.mxu1 %v2474_v31 }
 0x1a2   :  { %1723 = vmatprep.subr.bf16.mxu0 %v2479_v32  ;;  %1764 = vmatprep.subr.bf16.mxu1 %v2482_v33 }
 0x1a5   :  { %1724 = vmatpush2.bf16.msra.mxu0 %v2477_v34  ;;  %1765 = vmatpush2.bf16.msra.mxu1 %v2480_v53 }
 0x1a6   :  { %1725 = vmatprep.subr.bf16.mxu0 %v2485_v35  ;;  %1766 = vmatprep.subr.bf16.mxu1 %v2488_v42 }
 0x1a9   :  { %1726 = vmatpush2.bf16.msra.mxu0 %v2483_v8  ;;  %1767 = vmatpush2.bf16.msra.mxu1 %v2486_v55 }
 0x1aa   :  { %1727 = vmatprep.subr.bf16.mxu0 %v2491_v45  ;;  %1768 = vmatprep.subr.bf16.mxu1 %v2494_v59 }
 0x1ad   :  { %1728 = vmatpush2.bf16.msra.mxu0 %v2489_v6  ;;  %1769 = vmatpush2.bf16.msra.mxu1 %v2492_v60 }
 0x1ae   :  { %1729 = vmatprep.subr.bf16.mxu0 %v2497_v39  ;;  %1770 = vmatprep.subr.bf16.mxu1 %v2500_v15 }
 0x1b1   :  { %1730 = vmatpush2.bf16.msra.mxu0 %v2495_v56  ;;  %1771 = vmatpush2.bf16.msra.mxu1 %v2498_v54 }
 0x1b2   :  { %1731 = vmatprep.subr.bf16.mxu0 %v2503_v58  ;;  %1772 = vmatprep.subr.bf16.mxu1 %v2506_v62 }
 0x1b5   :  { %1732 = vmatpush2.bf16.msra.mxu0 %v2501_v52  ;;  %1773 = vmatpush2.bf16.msra.mxu1 %v2504_v44 }
 0x1b6   :  { %1733 = vmatprep.subr.bf16.mxu0 %v2509_v47  ;;  %1774 = vmatprep.subr.bf16.mxu1 %v2512_v41 }
 0x1b9   :  { %1734 = vmatpush2.bf16.msra.mxu0 %v2507_v46  ;;  %1775 = vmatpush2.bf16.msra.mxu1 %v2510_v63 }
 0x1ba   :  { %1735 = vmatprep.subr.bf16.mxu0 %v2515_v1  ;;  %1776 = vmatprep.subr.bf16.mxu1 %v2518_v2 }
 0x1bd   :  { %1736 = vmatpush2.bf16.msra.mxu0 %v2513_v3  ;;  %1777 = vmatpush2.bf16.msra.mxu1 %v2516_v4 }
 0x1be   :  { %2292 = vmatprep.subr.bf16.mxu0 %v2519_v10 }
 0x1c0   :  { %1738 = vmatmul.mubr.bf16.vlgmr.msra.gmra.mxu0 %v851_v0  ;;  %1779 = vmatmul.mubr.bf16.vlgmr.msra.gmra.mxu1 %v853_v9 }
 0x1c1   :  { %2293 = vmatpush3.bf16.msra.mxu0 %v2520_v11 }
 0x1c2   :  { %2294 = vmatprep.subr.bf16.mxu0 %v2521_v12 }
 0x1c5   :  { %2295 = vmatpush3.bf16.msra.mxu0 %v2522_v13 }
 0x1c6   :  { %2296 = vmatprep.subr.bf16.mxu0 %v2523_v14 }
 0x1c9   :  { %2297 = vmatpush3.bf16.msra.mxu0 %v2524_v37 }
 0x1ca   :  { %2298 = vmatprep.subr.bf16.mxu0 %v2525_v61 }
 0x1cd   :  { %2299 = vmatpush3.bf16.msra.mxu0 %v2526_v19 }
 0x1ce   :  { %2300 = vmatprep.subr.bf16.mxu0 %v2527_v51 }
 0x1d1   :  { %2301 = vmatpush3.bf16.msra.mxu0 %v2528_v40 }
 0x1d2   :  { %2302 = vmatprep.subr.bf16.mxu0 %v2529_v50 }
 0x1d5   :  { %2303 = vmatpush3.bf16.msra.mxu0 %v2530_v16 }
 0x1d6   :  { %2304 = vmatprep.subr.bf16.mxu0 %v2531_v57 }
 0x1d9   :  { %2305 = vmatpush3.bf16.msra.mxu0 %v2532_v29 }
 0x1da   :  { %2306 = vmatprep.subr.bf16.mxu0 %v2533_v17 }
 0x1dd   :  { %2307 = vmatpush3.bf16.msra.mxu0 %v2534_v38 }
 0x240   :  { %v1657_v20 = vpop.f32.mrf.mxu0  ;;  %v1698_v21 = vpop.f32.mrf.mxu1 }
 0x241   :  { %v1699_v36 = vadd.f32 %v1698_v21, %v1657_v20 }
 0x242   :  { %v1659_v22 = vpop.f32.mrf.mxu0  ;;  %v1700_v23 = vpop.f32.mrf.mxu1 }
 0x243   :  { %v1701_v30 = vadd.f32 %v1700_v23, %v1659_v22  ;;  %v1788_v22 = vld [vmem:[#allocation9 + $0x40] ss:$8 sm:$0x3] }
 0x244   :  { %v1661_v24 = vpop.f32.mrf.mxu0  ;;  %v1702_v25 = vpop.f32.mrf.mxu1 }
 0x246   :  { %v1662_v26 = vpop.f32.mrf.mxu0  ;;  %v1703_v43 = vpop.f32.mrf.mxu1 }
 0x280   :  { %v1739_v27 = vpop.f32.mrf.mxu0  ;;  %v1780_v28 = vpop.f32.mrf.mxu1 }
 0x281   :  { %v1740_v31 = vadd.f32 %v1739_v27, %v1699_v36 }
 0x282   :  { %v1741_v32 = vpop.f32.mrf.mxu0  ;;  %v1782_v33 = vpop.f32.mrf.mxu1 }
 0x283   :  { %v2864_v34 = vadd.f32 %v1780_v28, %v1740_v31  ;;  %v1742_v53 = vadd.f32 %v1741_v32, %v1701_v30  ;;  %v1790_v31 = vld [vmem:[#allocation9 + $0x41] ss:$8 sm:$0x3] }
 0x284   :  { %v1743_v35 = vpop.f32.mrf.mxu0  ;;  %v1784_v42 = vpop.f32.mrf.mxu1 }
 0x285   :  { %v1791_v8 = vrot.slane %v2864_v34, 4  ;;  %v1805_v55 = vmul.f32 %v2864_v34, %v2864_v34  ;;  %v1783_v45 = vadd.f32 %v1782_v33, %v1742_v53 }
 0x286   :  { %v1744_v59 = vpop.f32.mrf.mxu0  ;;  %v1785_v6 = vpop.f32.mrf.mxu1 }
 0x287   :  { %v1792_v60 = vadd.f32 %v1791_v8, %v2864_v34  ;;  %v1807_v39 = vrot.slane %v1805_v55, 4  ;;  %v1797_v15 = vrot.slane %v1783_v45, 4  ;;  %v1806_v56 = vmul.f32 %v1783_v45, %v1783_v45 }
 0x289   :  { %v1793_v54 = vrot.slane %v1792_v60, 2  ;;  %v1808_v58 = vadd.f32 %v1807_v39, %v1805_v55  ;;  %v1798_v62 = vadd.f32 %v1797_v15, %v1783_v45  ;;  %v1813_v52 = vrot.slane %v1806_v56, 4 }
 0x28b   :  { %v1794_v44 = vadd.f32 %v1793_v54, %v1792_v60  ;;  %v1809_v47 = vrot.slane %v1808_v58, 2  ;;  %v1799_v41 = vrot.slane %v1798_v62, 2  ;;  %v1814_v46 = vadd.f32 %v1813_v52, %v1806_v56 }
 0x28d   :  { %v1795_v63 = vrot.slane %v1794_v44, 1  ;;  %v1810_v1 = vadd.f32 %v1809_v47, %v1808_v58  ;;  %v1800_v2 = vadd.f32 %v1799_v41, %v1798_v62  ;;  %v1815_v3 = vrot.slane %v1814_v46, 2 }
 0x28f   :  { %v1796_v4 = vadd.f32 %v1795_v63, %v1794_v44  ;;  %v1811_v5 = vrot.slane %v1810_v1, 1  ;;  %v1801_v7 = vrot.slane %v1800_v2, 1  ;;  %v1816_v0 = vadd.f32 %v1815_v3, %v1814_v46 }
 0x291   :  { %v1803_v9 = vmul.f32 0.125, %v1796_v4  ;;  %v1812_v10 = vadd.f32 %v1811_v5, %v1810_v1  ;;  %v1802_v11 = vadd.f32 %v1801_v7, %v1800_v2  ;;  %v1817_v12 = vrot.slane %v1816_v0, 1 }
 0x293   :  { %v1819_v13 = vmul.f32 0.125, %v1812_v10  ;;  %v1821_v14 = vmul.f32 %v1803_v9, %v1803_v9  ;;  %v1818_v37 = vadd.f32 %v1817_v12, %v1816_v0  ;;  %v1804_v61 = vmul.f32 0.125, %v1802_v11  ;;  %v2069_v11 = vld [vmem:[#allocation9 + $0x50] ss:$0 sm:$0xff] }
 0x295   :  { %v1823_v19 = vsub.f32 %v1819_v13, %v1821_v14  ;;  %v1820_v51 = vmul.f32 0.125, %v1818_v37  ;;  %v1822_v40 = vmul.f32 %v1804_v61, %v1804_v61  ;;  %v2070_v14 = vld [vmem:[#allocation9 + $0x51] ss:$0 sm:$0xff] }
 0x297   :  { %v1825_v50 = vmax.f32 %v1823_v19, 0.0  ;;  %v1824_v16 = vsub.f32 %v1820_v51, %v1822_v40  ;;  %v2097_v40 = vld [vmem:[#allocation9 + $0x52] ss:$0 sm:$0xff] }
 0x299   :  { %v1827_v57 = vadd.f32 1e-05, %v1825_v50  ;;  %v1826_v29 = vmax.f32 %v1824_v16, 0.0 }
 0x29b   :  { %v1828_v17 = vadd.f32 1e-05, %v1826_v29  ;;  %2551 = vrsqrt.f32 %v1827_v57  ;;  %v2098_v57 = vld [vmem:[#allocation9 + $0x3] ss:$0 sm:$0xff] }
 0x29d   :  { %2553 = vrsqrt.f32 %v1828_v17 }
 0x2a8   :  { %v2552_v38 = vpop.eup %2551 }
 0x2aa   :  { %v2554_v20 = vpop.eup %2553 }
 0x2ab   :  { %v1833_v21 = vcombine.low %v2552_v38, %v2554_v20 }
 0x2ad   :  { %v1840_v36 = vrot.slane %v1833_v21, %v2812_v18 }
 0x2af   :  { %v1847_v23 = vrot.slane %v1840_v36, %v2812_v18 }
 0x2b1   :  { %v1849_v24 = vmul.f32 %v1847_v23, %v1788_v22 }
 0x2b3   :  { %v1854_v25 = vrot.slane %v1849_v24, %v2825_v48  ;;  %v1858_v26 = vrot.slane %v1849_v24, %v2828_v49 }
 0x2b5   :  { %v1861_v43 = vmul.f32 %v1854_v25, %v1803_v9  ;;  %v1862_v27 = vmul.f32 %v1858_v26, %v1804_v61  ;;  %v1883_v53 = vmul.f32 %v1858_v26, %v1783_v45  ;;  %v1882_v42 = vmul.f32 %v1854_v25, %v2864_v34 }
 0x2b7   :  { %v1865_v28 = vcombine.low %v1861_v43, %v1862_v27 }
 0x2b9   :  { %v1872_v30 = vrot.slane %v1865_v28, %v2812_v18 }
 0x2bb   :  { %v1879_v32 = vrot.slane %v1872_v30, %v2812_v18 }
 0x2bd   :  { %v1881_v33 = vsub.f32 %v1790_v31, %v1879_v32 }
 0x2bf   :  { %v1892_v35 = vrot.slane %v1881_v33, %v2828_v49  ;;  %v1888_v8 = vrot.slane %v1881_v33, %v2825_v48 }
 0x2c1   :  { %v1896_v55 = vadd.f32 %v1892_v35, %v1883_v53  ;;  %v1895_v59 = vadd.f32 %v1888_v8, %v1882_v42 }
 0x2c3   :  { %v1898_v6 = vmax.f32 %v1896_v55, 0.0  ;;  %v1897_v60 = vmax.f32 %v1895_v59, 0.0 }
 0x2c5   :  { %v1900_v39 = vpack.c.bf16 %v1898_v6, %v1898_v6  ;;  %v1899_v15 = vpack.c.bf16 %v1897_v60, %v1897_v60 }
 0x2c7   :  { %2061 = vmatprep.mubr.bf16.mxu0 %v1900_v39 }
 0x2c8   :  { %2062 = vmatmul.mubr.bf16.vlgmr.msra.gmra.mxu0 %v1899_v15 }
 0x388   :  { %v2308_v56 = vpop.f32.mrf.mxu0 }
 0x38a   :  { %v2309_v54 = vpop.f32.mrf.mxu0 }
 0x38b   :  { %v2310_v58 = vadd.f32 %v2309_v54, %v2308_v56 }
 0x38c   :  { %v2311_v18 = vpop.f32.mrf.mxu0 }
 0x38d   :  { %v2071_v62 = vrot.slane %v2310_v58, 4  ;;  %v2078_v45 = vmul.f32 %v2310_v58, %v2310_v58 }
 0x38e   :  { %v2312_v52 = vpop.f32.mrf.mxu0 }
 0x38f   :  { %v2072_v49 = vadd.f32 %v2310_v58, %v2071_v62  ;;  %v2079_v44 = vrot.slane %v2078_v45, 4 }
 0x391   :  { %v2073_v34 = vrot.slane %v2072_v49, 2  ;;  %v2080_v47 = vadd.f32 %v2079_v44, %v2078_v45 }
 0x393   :  { %v2074_v48 = vadd.f32 %v2073_v34, %v2072_v49  ;;  %v2081_v41 = vrot.slane %v2080_v47, 2 }
 0x395   :  { %v2082_v46 = vadd.f32 %v2081_v41, %v2080_v47  ;;  %v2075_v63 = vrot.slane %v2074_v48, 1 }
 0x397   :  { %v2083_v1 = vrot.slane %v2082_v46, 1  ;;  %v2076_v2 = vadd.f32 %v2075_v63, %v2074_v48 }
 0x399   :  { %v2084_v3 = vadd.f32 %v2083_v1, %v2082_v46  ;;  %v2077_v4 = vmul.f32 0.125, %v2076_v2 }
 0x39b   :  { %v2085_v5 = vmul.f32 0.125, %v2084_v3  ;;  %v2086_v7 = vmul.f32 %v2077_v4, %v2077_v4 }
 0x39d   :  { %v2087_v0 = vsub.f32 %v2085_v5, %v2086_v7 }
 0x39f   :  { %v2088_v9 = vmax.f32 %v2087_v0, 0.0 }
 0x3a1   :  { %v2089_v10 = vadd.f32 1e-05, %v2088_v9 }
 0x3a3   :  { %2555 = vrsqrt.f32 %v2089_v10 }
 0x3b0   :  { %v2556_v12 = vpop.eup %2555 }
 0x3b1   :  { %v2091_v13 = vmul.f32 %v2556_v12, %v2069_v11 }
 0x3b3   :  { %v2092_v37 = vmul.f32 %v2091_v13, %v2077_v4  ;;  %v2094_v19 = vmul.f32 %v2310_v58, %v2091_v13 }
 0x3b5   :  { %v2093_v61 = vsub.f32 %v2070_v14, %v2092_v37 }
 0x3b7   :  { %v2095_v51 = vadd.f32 %v2094_v19, %v2093_v61 }
 0x3b9   :  { %v2096_v50 = vmax.f32 %v2095_v51, 0.0 }
 0x3bb   :  { %v2099_v16 = vmul.f32 %v2097_v40, %v2096_v50 }
 0x3bd   :  { %2100 = vadd.xlane.f32.xlu0 %v2099_v16 }
 0x446   :  { %v2101_v29 = vpop.xlane.xlu0 %2100 }
 0x447   :  { %v2102_v17 = vadd.f32 %v2101_v29, %v2098_v57 }
 0x449   :  { %2104 = vst.msk [vmem:[%s2887_s5] sm:$0xff] %vm2103_vm1, %v2102_v17 }
 0x44a   :  { %2109 = vsyncpa [#allocation3], 1 }
 0x44b   :  { %2110 = vsyncpa [#allocation5], 1 }
 0x44c   :  { %2111 = vsyncpa [#allocation8], 1 }

</bundles_post_ra>
